<compile_context>
chip_gen: v6e
topology: v6e:2x2x1
jax: 0.10.0
libtpu: 0.0.40
codegen_flags: <defaults>
</compile_context>

<pallas_src>
import jax
import jax.numpy as jnp
from jax.experimental import pallas as pl
from jax.experimental.pallas import tpu as pltpu


def _se_gate_conv1x1_kernel(gate_ref, w_ref, x_ref, o_ref, acc_ref):
    # gate_ref: (tk, 1)    w_ref: (tk, Cout)    x_ref: (tk, HW)
    # o_ref:    (Cout, HW) resident across the reduction axis
    # acc_ref:  (Cout, HW) f32 scratch accumulator
    k = pl.program_id(0)

    @pl.when(k == 0)
    def _():
        acc_ref[...] = jnp.zeros_like(acc_ref)

    # Sigmoid on the EUP (free slot), fold into the small weight tile, then
    # feed the MXU with bf16 operands and an f32 accumulate.
    g = jax.nn.sigmoid(gate_ref[...].astype(jnp.float32))                 # (tk, 1)
    w_scaled = (w_ref[...].astype(jnp.float32) * g).astype(jnp.bfloat16)  # (tk, Cout)
    x_bf16 = x_ref[...].astype(jnp.bfloat16)                              # (tk, HW)

    # Contract the shared sublane axis tk: out[o, n] = sum_k w[k, o] * x[k, n]
    acc_ref[...] += jax.lax.dot_general(
        w_scaled, x_bf16,
        dimension_numbers=(((0,), (0,)), ((), ())),
        preferred_element_type=jnp.float32,
    )

    @pl.when(k == pl.num_programs(0) - 1)
    def _():
        o_ref[...] = acc_ref[...].astype(o_ref.dtype)


def _num_k_steps(cin):
    # 2-3 reduction steps hide the x DMA under the matmul; more steps only add
    # the ~0.35 us fixed per-step overhead.  tk must be a multiple of 8.
    for steps in (2, 3):
        if cin % steps == 0 and (cin // steps) % 8 == 0:
            return steps
    return 1


def se_gate_conv1x1(x_nchw, gate_nc11, weight_oi11):
    """Fused sigmoid-gate + 1x1 conv (no bias).

    x_nchw:      (1, Cin, H, W)    float32
    gate_nc11:   (1, Cin, 1, 1)    float32
    weight_oi11: (Cout, Cin, 1, 1) float32 (PyTorch Conv2d OIHW layout)
    returns:     (1, Cout, H, W)   float32
    """
    N, Cin, H, W = x_nchw.shape
    Cout = weight_oi11.shape[0]
    assert N == 1, "module is defined for batch size 1"

    HW = H * W
    # Free, contiguous reshapes on the activations (no transposes):
    x2d = x_nchw.reshape(Cin, HW)                  # (Cin, HW)
    gate2d = gate_nc11.reshape(Cin, 1)             # (Cin, 1)
    # One-time, tiny weight-side transpose so Cin is the sublane axis and the
    # reduction can be tiled without touching a lane axis of size 480.
    w_io = weight_oi11.reshape(Cout, Cin).T        # (Cin, Cout)

    n_k = _num_k_steps(Cin)
    tk = Cin // n_k

    flops = 2 * Cout * Cin * HW
    bytes_accessed = (x2d.size + w_io.size + gate2d.size + Cout * HW) * 4

    out2d = pl.pallas_call(
        _se_gate_conv1x1_kernel,
        out_shape=jax.ShapeDtypeStruct((Cout, HW), x_nchw.dtype),
        grid_spec=pltpu.PrefetchScalarGridSpec(
            num_scalar_prefetch=0,
            grid=(n_k,),
            in_specs=[
                pl.BlockSpec((tk, 1), lambda k: (k, 0)),     # gate chunk
                pl.BlockSpec((tk, Cout), lambda k: (k, 0)),  # weight chunk
                pl.BlockSpec((tk, HW), lambda k: (k, 0)),    # activation chunk
            ],
            out_specs=pl.BlockSpec((Cout, HW), lambda k: (0, 0)),  # resident
            scratch_shapes=[pltpu.VMEM((Cout, HW), jnp.float32)],
        ),
        compiler_params=pltpu.CompilerParams(
            dimension_semantics=("arbitrary",),
        ),
        cost_estimate=pl.CostEstimate(
            flops=flops, transcendentals=Cin, bytes_accessed=bytes_accessed,
        ),
    )(gate2d, w_io, x2d)

    # (Cout, HW) -> (1, Cout, H, W): free reshape, no transpose.
    return out2d.reshape(N, Cout, H, W)


def _reference(x_nchw, gate_nc11, weight_oi11):
    g = jax.nn.sigmoid(gate_nc11)
    xg = x_nchw * g
    return jax.lax.conv_general_dilated(
        xg, weight_oi11, window_strides=(1, 1), padding="VALID",
        dimension_numbers=("NCHW", "OIHW", "NCHW"),
    )


if __name__ == "__main__":
    key = jax.random.PRNGKey(0)
    k1, k2, k3 = jax.random.split(key, 3)

    N, Cin, H, W, Cout = 1, 480, 28, 28, 80
    x178 = jax.random.normal(k1, (N, Cin, H, W), dtype=jnp.float32)
    x182 = jax.random.normal(k2, (N, Cin, 1, 1), dtype=jnp.float32)
    weight = jax.random.normal(k3, (Cout, Cin, 1, 1), dtype=jnp.float32) * (1.0 / (Cin ** 0.5))

    out = jax.block_until_ready(se_gate_conv1x1(x178, x182, weight))
    ref = jax.block_until_ready(_reference(x178, x182, weight))

    assert out.shape == (N, Cout, H, W), out.shape
    # bf16 MXU operands with f32 accumulate: tolerance loosened deliberately
    # (expected max error ~1e-2 at K=480; f32 reference).
    assert jnp.allclose(out, ref, atol=2e-2, rtol=2e-2), float(jnp.max(jnp.abs(out - ref)))

    print("KERNEL_OK")
</pallas_src>

<mosaic_0001>
module attributes {stable_mosaic.version = 11 : i64} {
  func.func @_se_gate_conv1x1_kernel(%arg0: i32, %arg1: memref<240x1xf32, #tpu.memory_space<vmem>>, %arg2: memref<240x80xf32, #tpu.memory_space<vmem>>, %arg3: memref<240x784xf32, #tpu.memory_space<vmem>>, %arg4: memref<80x784xf32, #tpu.memory_space<vmem>>, %arg5: memref<80x784xf32, #tpu.memory_space<vmem>>) attributes {dimension_semantics = [#tpu.dimension_semantics<arbitrary>], iteration_bounds = array<i64: 2>, scalar_prefetch = 0 : i64, scratch_operands = 1 : i64, tpu.core_type = #tpu.core_type<tc>, window_params = [{transform_indices = @transform_0, window_bounds = array<i64: 240, 1>}, {transform_indices = @transform_1, window_bounds = array<i64: 240, 80>}, {transform_indices = @transform_2, window_bounds = array<i64: 240, 784>}, {pipeline_mode = #tpu.pipeline_mode<synchronous>, transform_indices = @transform_3, window_bounds = array<i64: 80, 784>}]} {
    %c0_i32 = arith.constant 0 : i32
    %0 = arith.cmpi eq, %arg0, %c0_i32 : i32
    %1 = arith.extui %0 : i1 to i32
    %c0_i32_0 = arith.constant 0 : i32
    %2 = arith.cmpi ne, %1, %c0_i32_0 : i32
    scf.if %2 {
      %cst_12 = arith.constant 0.000000e+00 : f32
      %22 = vector.broadcast %cst_12 : f32 to vector<80x784xf32>
      %c0_13 = arith.constant 0 : index
      %c0_14 = arith.constant 0 : index
      %23 = vector.load %arg5[%c0_13, %c0_14] : memref<80x784xf32, #tpu.memory_space<vmem>>, vector<80x784xf32>
      tpu.vector_store %arg5[%c0_13, %c0_14], %22 {strides = array<i32>} : memref<80x784xf32, #tpu.memory_space<vmem>>, vector<80x784xf32>,
    } else {
    }
    %c0 = arith.constant 0 : index
    %c0_1 = arith.constant 0 : index
    %3 = vector.load %arg1[%c0, %c0_1] : memref<240x1xf32, #tpu.memory_space<vmem>>, vector<240x1xf32>
    %4 = arith.negf %3 : vector<240x1xf32>
    %5 = math.exp %4 : vector<240x1xf32>
    %cst = arith.constant 1.000000e+00 : f32
    %6 = vector.broadcast %cst : f32 to vector<240x1xf32>
    %7 = arith.addf %6, %5 : vector<240x1xf32>
    %8 = arith.divf %6, %7 : vector<240x1xf32>
    %c0_2 = arith.constant 0 : index
    %c0_3 = arith.constant 0 : index
    %9 = vector.load %arg2[%c0_2, %c0_3] : memref<240x80xf32, #tpu.memory_space<vmem>>, vector<240x80xf32>
    %10 = vector.broadcast %8 : vector<240x1xf32> to vector<240x80xf32>
    %11 = arith.mulf %9, %10 : vector<240x80xf32>
    %12 = arith.truncf %11 : vector<240x80xf32> to vector<240x80xbf16>
    %c0_4 = arith.constant 0 : index
    %c0_5 = arith.constant 0 : index
    %13 = vector.load %arg3[%c0_4, %c0_5] : memref<240x784xf32, #tpu.memory_space<vmem>>, vector<240x784xf32>
    %14 = arith.truncf %13 : vector<240x784xf32> to vector<240x784xbf16>
    %c0_6 = arith.constant 0 : index
    %c0_7 = arith.constant 0 : index
    %15 = vector.load %arg5[%c0_6, %c0_7] : memref<80x784xf32, #tpu.memory_space<vmem>>, vector<80x784xf32>
    %cst_8 = arith.constant dense<0.000000e+00> : vector<80x784xf32>
    %16 = tpu.matmul %12, %14, %cst_8 {dimension_numbers = #tpu.dot_dimension_numbers<[0], [0], [1], [1], [0, 1, 1, 1], [], []>} : vector<240x80xbf16>, vector<240x784xbf16>, vector<80x784xf32> -> vector<80x784xf32>
    %17 = arith.addf %15, %16 : vector<80x784xf32>
    %c0_9 = arith.constant 0 : index
    %c0_10 = arith.constant 0 : index
    %18 = vector.load %arg5[%c0_9, %c0_10] : memref<80x784xf32, #tpu.memory_space<vmem>>, vector<80x784xf32>
    tpu.vector_store %arg5[%c0_9, %c0_10], %17 {strides = array<i32>} : memref<80x784xf32, #tpu.memory_space<vmem>>, vector<80x784xf32>,
    %c1_i32 = arith.constant 1 : i32
    %19 = arith.cmpi eq, %arg0, %c1_i32 : i32
    %20 = arith.extui %19 : i1 to i32
    %c0_i32_11 = arith.constant 0 : i32
    %21 = arith.cmpi ne, %20, %c0_i32_11 : i32
    scf.if %21 {
      %c0_12 = arith.constant 0 : index
      %c0_13 = arith.constant 0 : index
      %22 = vector.load %arg5[%c0_12, %c0_13] : memref<80x784xf32, #tpu.memory_space<vmem>>, vector<80x784xf32>
      %c0_14 = arith.constant 0 : index
      %c0_15 = arith.constant 0 : index
      %23 = vector.load %arg4[%c0_14, %c0_15] : memref<80x784xf32, #tpu.memory_space<vmem>>, vector<80x784xf32>
      tpu.vector_store %arg4[%c0_14, %c0_15], %22 {strides = array<i32>} : memref<80x784xf32, #tpu.memory_space<vmem>>, vector<80x784xf32>,
    } else {
    }
    return
  }
  func.func @transform_0(%arg0: i32) -> (i32, i32) {
    %c0_i32 = arith.constant 0 : i32
    %c0_i32_0 = arith.constant 0 : i32
    return %arg0, %c0_i32 : i32, i32
  }
  func.func @transform_1(%arg0: i32) -> (i32, i32) {
    %c0_i32 = arith.constant 0 : i32
    %c0_i32_0 = arith.constant 0 : i32
    return %arg0, %c0_i32 : i32, i32
  }
  func.func @transform_2(%arg0: i32) -> (i32, i32) {
    %c0_i32 = arith.constant 0 : i32
    %c0_i32_0 = arith.constant 0 : i32
    return %arg0, %c0_i32 : i32, i32
  }
  func.func @transform_3(%arg0: i32) -> (i32, i32) {
    %c0_i32 = arith.constant 0 : i32
    %c0_i32_0 = arith.constant 0 : i32
    %c0_i32_1 = arith.constant 0 : i32
    return %c0_i32, %c0_i32_0 : i32, i32
  }
}

</mosaic_0001>

<bundles_post_ra>
// kernel: tpu_custom_call.1
= control target key start
LH: loop header
LB: loop body
LE: loop exit
PB: predicated region body
PF: predicated region fallthrough
CT: control target
= control target key end

     0   :  { %8 = vsyncpa [#allocation4], 0  ;;  %s2095_s12 = smov 0   ;;  %s2605_s0 = inlined_call_operand.vmem [shape: f32[480,1], index: 0, kind: input, shape index: {}]   ;;  %s2606_s1 = inlined_call_operand.vmem [shape: f32[480,80], index: 1, kind: input, shape index: {}]   ;;  %s2607_s2 = inlined_call_operand.vmem [shape: f32[480,784], index: 2, kind: input, shape index: {}]   ;;  %s2608_s3 = inlined_call_operand.hbm [shape: f32[80,784], index: 3, kind: output, shape index: {}]  }
   0x1 LB: > { %s2101_s13 = sadd.s32 4294967295, %s2068_s12   ;;  %p1832_p0 = scmp.ge.s32.totalorder %s2068_s12, 1  ;;  %s2068_s12 = sphi %s2095_s12, %s14_s12  }
   0x2   : > { %p157_p1 = scmp.lt.s32.totalorder %s2068_s12, 3 }
   0x4   : > { %p158_p2 = pnand %p1832_p0, %p157_p1 }
   0x5   : > { %s187_s14 = smul.u32 (!%p158_p2), 30, %s2101_s13  ;;  %p1836_p4 = scmp.ne.s32.totalorder (!%p158_p2), %s2101_s13, 0 }
   0x6   : > { %161 = sbr.rel (%p158_p2) target bundleno = 688 (0x2b0), region = 32 }
   0x7   : > { %p188_p3 = scmp.lt.s32.totalorder (!%p158_p2), %s187_s14, 59 }
   0xb   : > { %s2610_s14 = smov (!%p188_p3, %s187_s14), 59  ;;  %210 = sbr.rel (%p1836_p4) target bundleno = 52 (0x34), region = 36 }
   0xc   : > { %s1833_s15 = sshll.u32 %s2610_s14, 3  ;;  %s1892_s16 = smul.u32 56, %s2610_s14 }
   0xd   : > { %s2109_s19 = scalar_lea.vmem %s2605_s0, %s1833_s15  ;;  %s2114_s22 = scalar_lea.vmem %s2606_s1, %s1833_s15 }
   0xe   : > { %s2119_s25 = scalar_lea.vmem %s2607_s2, %s1892_s16 }
  0x10   : > { %vm217_vm0 = vcmask 130048   ;;  %v2070_v0 = vmov 0.0  }
  0x11   : > { %211 = vst [vmem:[#allocation2] sm:$0xff] %v2070_v0  ;;  %212 = vst [vmem:[#allocation2 + $0x8] sm:$0xff] %v2070_v0 }
  0x12   : > { %213 = vst [vmem:[#allocation2 + $0x10] sm:$0xff] %v2070_v0  ;;  %214 = vst [vmem:[#allocation2 + $0x18] sm:$0xff] %v2070_v0 }
  0x13   : > { %215 = vst [vmem:[#allocation2 + $0x20] sm:$0xff] %v2070_v0  ;;  %216 = vst [vmem:[#allocation2 + $0x28] sm:$0xff] %v2070_v0 }
  0x14   : > { %219 = vst [vmem:[#allocation2 + $0x38] sm:$0xff] %v2070_v0  ;;  %220 = vst [vmem:[#allocation2 + $0x40] sm:$0xff] %v2070_v0 }
  0x15   : > { %221 = vst [vmem:[#allocation2 + $0x48] sm:$0xff] %v2070_v0  ;;  %222 = vst [vmem:[#allocation2 + $0x50] sm:$0xff] %v2070_v0 }
  0x16   : > { %223 = vst [vmem:[#allocation2 + $0x58] sm:$0xff] %v2070_v0  ;;  %224 = vst [vmem:[#allocation2 + $0x60] sm:$0xff] %v2070_v0 }
  0x17   : > { %226 = vst [vmem:[#allocation2 + $0x70] sm:$0xff] %v2070_v0  ;;  %227 = vst [vmem:[#allocation2 + $0x78] sm:$0xff] %v2070_v0 }
  0x18   : > { %228 = vst [vmem:[#allocation2 + $0x80] sm:$0xff] %v2070_v0  ;;  %229 = vst [vmem:[#allocation2 + $0x88] sm:$0xff] %v2070_v0 }
  0x19   : > { %230 = vst [vmem:[#allocation2 + $0x90] sm:$0xff] %v2070_v0  ;;  %231 = vst [vmem:[#allocation2 + $0x98] sm:$0xff] %v2070_v0 }
  0x1a   : > { %233 = vst [vmem:[#allocation2 + $0xa8] sm:$0xff] %v2070_v0  ;;  %234 = vst [vmem:[#allocation2 + $0xb0] sm:$0xff] %v2070_v0 }
  0x1b   : > { %235 = vst [vmem:[#allocation2 + $0xb8] sm:$0xff] %v2070_v0  ;;  %236 = vst [vmem:[#allocation2 + $0xc0] sm:$0xff] %v2070_v0 }
  0x1c   : > { %237 = vst [vmem:[#allocation2 + $0xc8] sm:$0xff] %v2070_v0  ;;  %238 = vst [vmem:[#allocation2 + $0xd0] sm:$0xff] %v2070_v0 }
  0x1d   : > { %240 = vst [vmem:[#allocation2 + $0xe0] sm:$0xff] %v2070_v0  ;;  %241 = vst [vmem:[#allocation2 + $0xe8] sm:$0xff] %v2070_v0 }
  0x1e   : > { %242 = vst [vmem:[#allocation2 + $0xf0] sm:$0xff] %v2070_v0  ;;  %243 = vst [vmem:[#allocation2 + $0xf8] sm:$0xff] %v2070_v0 }
  0x1f   : > { %244 = vst [vmem:[#allocation2 + $0x100] sm:$0xff] %v2070_v0  ;;  %245 = vst [vmem:[#allocation2 + $0x108] sm:$0xff] %v2070_v0 }
  0x20   : > { %247 = vst [vmem:[#allocation2 + $0x118] sm:$0xff] %v2070_v0  ;;  %248 = vst [vmem:[#allocation2 + $0x120] sm:$0xff] %v2070_v0 }
  0x21   : > { %249 = vst [vmem:[#allocation2 + $0x128] sm:$0xff] %v2070_v0  ;;  %250 = vst [vmem:[#allocation2 + $0x130] sm:$0xff] %v2070_v0 }
  0x22   : > { %251 = vst [vmem:[#allocation2 + $0x138] sm:$0xff] %v2070_v0  ;;  %252 = vst [vmem:[#allocation2 + $0x140] sm:$0xff] %v2070_v0 }
  0x23   : > { %254 = vst [vmem:[#allocation2 + $0x150] sm:$0xff] %v2070_v0  ;;  %255 = vst [vmem:[#allocation2 + $0x158] sm:$0xff] %v2070_v0 }
  0x24   : > { %256 = vst [vmem:[#allocation2 + $0x160] sm:$0xff] %v2070_v0  ;;  %257 = vst [vmem:[#allocation2 + $0x168] sm:$0xff] %v2070_v0 }
  0x25   : > { %258 = vst [vmem:[#allocation2 + $0x170] sm:$0xff] %v2070_v0  ;;  %259 = vst [vmem:[#allocation2 + $0x178] sm:$0xff] %v2070_v0 }
  0x26   : > { %261 = vst [vmem:[#allocation2 + $0x188] sm:$0xff] %v2070_v0  ;;  %262 = vst [vmem:[#allocation2 + $0x190] sm:$0xff] %v2070_v0 }
  0x27   : > { %263 = vst [vmem:[#allocation2 + $0x198] sm:$0xff] %v2070_v0  ;;  %264 = vst [vmem:[#allocation2 + $0x1a0] sm:$0xff] %v2070_v0 }
  0x28   : > { %265 = vst [vmem:[#allocation2 + $0x1a8] sm:$0xff] %v2070_v0  ;;  %266 = vst [vmem:[#allocation2 + $0x1b0] sm:$0xff] %v2070_v0 }
  0x29   : > { %268 = vst [vmem:[#allocation2 + $0x1c0] sm:$0xff] %v2070_v0  ;;  %269 = vst [vmem:[#allocation2 + $0x1c8] sm:$0xff] %v2070_v0 }
  0x2a   : > { %270 = vst [vmem:[#allocation2 + $0x1d0] sm:$0xff] %v2070_v0  ;;  %271 = vst [vmem:[#allocation2 + $0x1d8] sm:$0xff] %v2070_v0 }
  0x2b   : > { %272 = vst [vmem:[#allocation2 + $0x1e0] sm:$0xff] %v2070_v0  ;;  %273 = vst [vmem:[#allocation2 + $0x1e8] sm:$0xff] %v2070_v0 }
  0x2c   : > { %275 = vst [vmem:[#allocation2 + $0x1f8] sm:$0xff] %v2070_v0  ;;  %276 = vst [vmem:[#allocation2 + $0x200] sm:$0xff] %v2070_v0 }
  0x2d   : > { %277 = vst [vmem:[#allocation2 + $0x208] sm:$0xff] %v2070_v0  ;;  %278 = vst [vmem:[#allocation2 + $0x210] sm:$0xff] %v2070_v0 }
  0x2e   : > { %279 = vst [vmem:[#allocation2 + $0x218] sm:$0xff] %v2070_v0  ;;  %280 = vst [vmem:[#allocation2 + $0x220] sm:$0xff] %v2070_v0 }
  0x2f   : > { %218 = vst.msk [vmem:[#allocation2 + $0x30] sm:$0xff] %vm217_vm0, %v2070_v0  ;;  %225 = vst.msk [vmem:[#allocation2 + $0x68] sm:$0xff] %vm217_vm0, %v2070_v0 }
  0x30   : > { %232 = vst.msk [vmem:[#allocation2 + $0xa0] sm:$0xff] %vm217_vm0, %v2070_v0  ;;  %239 = vst.msk [vmem:[#allocation2 + $0xd8] sm:$0xff] %vm217_vm0, %v2070_v0 }
  0x31   : > { %246 = vst.msk [vmem:[#allocation2 + $0x110] sm:$0xff] %vm217_vm0, %v2070_v0  ;;  %253 = vst.msk [vmem:[#allocation2 + $0x148] sm:$0xff] %vm217_vm0, %v2070_v0 }
  0x32   : > { %260 = vst.msk [vmem:[#allocation2 + $0x180] sm:$0xff] %vm217_vm0, %v2070_v0  ;;  %267 = vst.msk [vmem:[#allocation2 + $0x1b8] sm:$0xff] %vm217_vm0, %v2070_v0 }
  0x33   : > { %274 = vst.msk [vmem:[#allocation2 + $0x1f0] sm:$0xff] %vm217_vm0, %v2070_v0  ;;  %281 = vst.msk [vmem:[#allocation2 + $0x228] sm:$0xff] %vm217_vm0, %v2070_v0 }
  0x34 PF: > { %v298_v1 = vld [vmem:[%s2109_s19 + $0x80] sm:$0xff]  ;;  %v299_v3 = vld [vmem:[%s2109_s19 + $0x88] sm:$0xff]  ;;  %v2071_v4 = vmov 0   ;;  %v285_v9 = vld [vmem:[%s2109_s19 + $0x18] sm:$0xff]  ;;  %vm1134_vm1 = vcmask 916480   ;;  %vm1548_vm2 = vcmask 130048  }
  0x35   : > { %v282_v2 = vld [vmem:[%s2109_s19] sm:$0xff]  ;;  %1913 = vset.pattern.permute.xlu1 %v2071_v4  ;;  %1912 = vset.pattern.permute.xlu0 %v2071_v4  ;;  %v1853_v5 = vmul.f32 -1.442695, %v298_v1  ;;  %v1854_v7 = vmul.f32 -1.442695, %v299_v3  ;;  %v283_v8 = vld [vmem:[%s2109_s19 + $0x8] sm:$0xff] }
  0x36   : > { %v1837_v6 = vmul.f32 -1.442695, %v282_v2  ;;  %v284_v10 = vld [vmem:[%s2109_s19 + $0x10] sm:$0xff]  ;;  %v1838_v11 = vmul.f32 -1.442695, %v283_v8  ;;  %v301_v14 = vld [vmem:[%s2109_s19 + $0x98] sm:$0xff] }
  0x37   : > { %1914 = vpow2.f32 %v1853_v5  ;;  %v1840_v12 = vmul.f32 -1.442695, %v285_v9  ;;  %v1839_v13 = vmul.f32 -1.442695, %v284_v10  ;;  %v300_v15 = vld [vmem:[%s2109_s19 + $0x90] sm:$0xff]  ;;  %v287_v16 = vld [vmem:[%s2109_s19 + $0x28] sm:$0xff] }
  0x38   : > { %1916 = vpow2.f32 %v1837_v6  ;;  %v1856_v17 = vmul.f32 -1.442695, %v301_v14  ;;  %v1855_v18 = vmul.f32 -1.442695, %v300_v15  ;;  %v286_v19 = vld [vmem:[%s2109_s19 + $0x20] sm:$0xff]  ;;  %v303_v20 = vld [vmem:[%s2109_s19 + $0xa8] sm:$0xff] }
  0x39   : > { %1918 = vpow2.f32 %v1854_v7  ;;  %v1842_v21 = vmul.f32 -1.442695, %v287_v16  ;;  %v302_v22 = vld [vmem:[%s2109_s19 + $0xa0] sm:$0xff]  ;;  %v1841_v23 = vmul.f32 -1.442695, %v286_v19  ;;  %v289_v24 = vld [vmem:[%s2109_s19 + $0x38] sm:$0xff] }
  0x3a   : > { %1920 = vpow2.f32 %v1838_v11  ;;  %v1858_v25 = vmul.f32 -1.442695, %v303_v20  ;;  %v288_v26 = vld [vmem:[%s2109_s19 + $0x30] sm:$0xff]  ;;  %v1857_v27 = vmul.f32 -1.442695, %v302_v22  ;;  %v305_v31 = vld [vmem:[%s2109_s19 + $0xb8] sm:$0xff] }
  0x3b   : > { %1922 = vpow2.f32 %v1840_v12  ;;  %v1844_v28 = vmul.f32 -1.442695, %v289_v24  ;;  %v1843_v29 = vmul.f32 -1.442695, %v288_v26  ;;  %v304_v34 = vld [vmem:[%s2109_s19 + $0xb0] sm:$0xff]  ;;  %v291_v59 = vld [vmem:[%s2109_s19 + $0x48] sm:$0xff] }
  0x3c   : > { %1924 = vpow2.f32 %v1839_v13  ;;  %v1860_v39 = vmul.f32 -1.442695, %v305_v31  ;;  %v1859_v42 = vmul.f32 -1.442695, %v304_v34  ;;  %v290_v62 = vld [vmem:[%s2109_s19 + $0x40] sm:$0xff]  ;;  %v307_v0 = vld [vmem:[%s2109_s19 + $0xc8] sm:$0xff] }
  0x3d   : > { %1926 = vpow2.f32 %v1856_v17  ;;  %v1846_v1 = vmul.f32 -1.442695, %v291_v59  ;;  %v306_v2 = vld [vmem:[%s2109_s19 + $0xc0] sm:$0xff]  ;;  %v1845_v5 = vmul.f32 -1.442695, %v290_v62  ;;  %v293_v6 = vld [vmem:[%s2109_s19 + $0x58] sm:$0xff] }
  0x3e   : > { %1928 = vpow2.f32 %v1855_v18  ;;  %v1862_v8 = vmul.f32 -1.442695, %v307_v0  ;;  %v292_v9 = vld [vmem:[%s2109_s19 + $0x50] sm:$0xff]  ;;  %v1861_v11 = vmul.f32 -1.442695, %v306_v2  ;;  %v309_v12 = vld [vmem:[%s2109_s19 + $0xd8] sm:$0xff] }
  0x3f   : > { %1930 = vpow2.f32 %v1842_v21  ;;  %v1848_v14 = vmul.f32 -1.442695, %v293_v6  ;;  %v308_v15 = vld [vmem:[%s2109_s19 + $0xd0] sm:$0xff]  ;;  %v1847_v17 = vmul.f32 -1.442695, %v292_v9  ;;  %v295_v22 = vld [vmem:[%s2109_s19 + $0x68] sm:$0xff] }
  0x40   : > { %1932 = vpow2.f32 %v1841_v23  ;;  %v1864_v19 = vmul.f32 -1.442695, %v309_v12  ;;  %v1863_v21 = vmul.f32 -1.442695, %v308_v15  ;;  %v310_v31 = vld [vmem:[%s2109_s19 + $0xe0] sm:$0xff]  ;;  %v297_v34 = vld [vmem:[%s2109_s19 + $0x78] sm:$0xff] }
  0x41   : > { %1934 = vpow2.f32 %v1858_v25  ;;  %v294_v25 = vld [vmem:[%s2109_s19 + $0x60] sm:$0xff]  ;;  %p1887_p5 = scmp.ne.s32.totalorder %s2101_s13, 1 }
  0x42   : > { %1936 = vpow2.f32 %v1857_v27 }
  0x43   : > { %1938 = vpow2.f32 %v1844_v28  ;;  %v311_v28 = vld [vmem:[%s2109_s19 + $0xe8] sm:$0xff] }
  0x44   : > { %v1915_v30 = vpop.eup %1914  ;;  %1940 = vpow2.f32 %v1843_v29 }
  0x45   : > { %v1917_v32 = vpop.eup %1916  ;;  %v418_v33 = vadd.f32 1.0, %v1915_v30  ;;  %v1850_v30 = vmul.f32 -1.442695, %v295_v22 }
  0x46   : > { %v1919_v35 = vpop.eup %1918  ;;  %v402_v36 = vadd.f32 1.0, %v1917_v32 }
  0x47   : > { %v1921_v37 = vpop.eup %1920  ;;  %1942 = vrcp.f32 %v418_v33  ;;  %v419_v38 = vadd.f32 1.0, %v1919_v35  ;;  %v1849_v33 = vmul.f32 -1.442695, %v294_v25 }
  0x48   : > { %v1923_v40 = vpop.eup %1922  ;;  %1944 = vrcp.f32 %v402_v36  ;;  %v403_v41 = vadd.f32 1.0, %v1921_v37  ;;  %v1866_v36 = vmul.f32 -1.442695, %v311_v28  ;;  %v296_v37 = vld [vmem:[%s2109_s19 + $0x70] sm:$0xff]  ;;  %v818_v28 = vld [vmem:[%s2119_s25 + $0x328] sm:$0xff] }
  0x49   : > { %v1925_v43 = vpop.eup %1924  ;;  %1946 = vrcp.f32 %v419_v38  ;;  %v405_v44 = vadd.f32 1.0, %v1923_v40 }
  0x4a   : > { %v1927_v45 = vpop.eup %1926  ;;  %1948 = vrcp.f32 %v403_v41  ;;  %v404_v46 = vadd.f32 1.0, %v1925_v43  ;;  %v1852_v41 = vmul.f32 -1.442695, %v297_v34  ;;  %v1851_v43 = vmul.f32 -1.442695, %v296_v37  ;;  %v802_v37 = vld [vmem:[%s2119_s25 + $0x2a8] sm:$0xff] }
  0x4b   : > { %v1929_v47 = vpop.eup %1928  ;;  %v421_v48 = vadd.f32 1.0, %v1927_v45  ;;  %1950 = vpow2.f32 %v1860_v39  ;;  %v1865_v39 = vmul.f32 -1.442695, %v310_v31  ;;  %v815_v31 = vld [vmem:[%s2119_s25 + $0x310] sm:$0xff] }
  0x4c   : > { %v1931_v49 = vpop.eup %1930  ;;  %v420_v50 = vadd.f32 1.0, %v1929_v47  ;;  %1952 = vpow2.f32 %v1859_v42 }
  0x4d   : > { %v1933_v51 = vpop.eup %1932  ;;  %1954 = vrcp.f32 %v405_v44  ;;  %v407_v52 = vadd.f32 1.0, %v1931_v49 }
  0x4e   : > { %v1935_v53 = vpop.eup %1934  ;;  %1956 = vrcp.f32 %v404_v46  ;;  %v406_v54 = vadd.f32 1.0, %v1933_v51 }
  0x4f   : > { %v1937_v55 = vpop.eup %1936  ;;  %1958 = vrcp.f32 %v421_v48  ;;  %v423_v56 = vadd.f32 1.0, %v1935_v53 }
  0x50   : > { %v1939_v57 = vpop.eup %1938  ;;  %1960 = vrcp.f32 %v420_v50  ;;  %v422_v58 = vadd.f32 1.0, %v1937_v55 }
  0x51   : > { %v1941_v60 = vpop.eup %1940  ;;  %1962 = vrcp.f32 %v407_v52  ;;  %v409_v61 = vadd.f32 1.0, %v1939_v57 }
  0x52   : > { %1964 = vrcp.f32 %v406_v54  ;;  %v408_v63 = vadd.f32 1.0, %v1941_v60 }
  0x53   : > { %1966 = vrcp.f32 %v423_v56 }
  0x54   : > { %v1943_v3 = vpop.eup %1942  ;;  %1968 = vrcp.f32 %v422_v58 }
  0x55   : > { %v1945_v7 = vpop.eup %1944  ;;  %604 = vperm.xlu1 %1913, %v1943_v3   ;;  %1970 = vrcp.f32 %v409_v61 }
  0x56   : > { %v1947_v10 = vpop.eup %1946  ;;  %524 = vperm.xlu0 %1912, %v1945_v7   ;;  %1972 = vrcp.f32 %v408_v63 }
  0x57   : > { %v1949_v13 = vpop.eup %1948  ;;  %1974 = vpow2.f32 %v1846_v1 }
  0x58   : > { %v1951_v16 = vpop.eup %1950  ;;  %1976 = vpow2.f32 %v1845_v5 }
  0x59   : > { %v1953_v18 = vpop.eup %1952  ;;  %609 = vperm.xlu1 %1913, %v1947_v10   ;;  %1978 = vpow2.f32 %v1862_v8  ;;  %v425_v24 = vadd.f32 1.0, %v1951_v16 }
  0x5a   : > { %v1955_v20 = vpop.eup %1954  ;;  %529 = vperm.xlu0 %1912, %v1949_v13   ;;  %1980 = vpow2.f32 %v1861_v11  ;;  %v424_v27 = vadd.f32 1.0, %v1953_v18 }
  0x5b   : > { %v1957_v23 = vpop.eup %1956  ;;  %1982 = vpow2.f32 %v1848_v14 }
  0x5c   : > { %v1959_v26 = vpop.eup %1958  ;;  %1984 = vpow2.f32 %v1847_v17 }
  0x5d   : > { %v1961_v29 = vpop.eup %1960  ;;  %539 = vperm.xlu1 %1913, %v1955_v20   ;;  %1986 = vpow2.f32 %v1864_v19 }
  0x5e   : > { %v1963_v32 = vpop.eup %1962  ;;  %534 = vperm.xlu0 %1912, %v1957_v23   ;;  %1988 = vpow2.f32 %v1863_v21 }
  0x5f   : > { %v1965_v35 = vpop.eup %1964  ;;  %1990 = vrcp.f32 %v425_v24 }
  0x60   : > { %v1967_v38 = vpop.eup %1966  ;;  %1992 = vrcp.f32 %v424_v27  ;;  %v823_v27 = vld [vmem:[%s2119_s25 + $0x350] sm:$0xff] }
  0x61   : > { %v1969_v40 = vpop.eup %1968  ;;  %619 = vperm.xlu1 %1913, %v1959_v26   ;;  %1994 = vpow2.f32 %v1850_v30  ;;  %v816_v26 = vld [vmem:[%s2119_s25 + $0x318] sm:$0xff]  ;;  %v825_v30 = vld [vmem:[%s2119_s25 + $0x360] sm:$0xff] }
  0x62   : > { %v1971_v42 = vpop.eup %1970  ;;  %614 = vperm.xlu0 %1912, %v1961_v29   ;;  %1996 = vpow2.f32 %v1849_v33  ;;  %v977_v29 = vpack.c.bf16 %v823_v27, %v816_v26  ;;  %v979_v33 = vpack.c.bf16 %v825_v30, %v818_v28  ;;  %v745_v28 = vld [vmem:[%s2119_s25 + $0xe0] sm:$0xff]  ;;  %v747_v30 = vld [vmem:[%s2119_s25 + $0xf0] sm:$0xff] }
  0x63   : > { %v1973_v44 = vpop.eup %1972  ;;  %1998 = vpow2.f32 %v1866_v36  ;;  %v824_v36 = vld [vmem:[%s2119_s25 + $0x358] sm:$0xff] }
  0x64   : > { %v1975_v45 = vpop.eup %1974  ;;  %2000 = vpow2.f32 %v1865_v39  ;;  %1150 = vmatprep.subr.bf16.mxu0 %v977_v29  ;;  %v809_v39 = vld [vmem:[%s2119_s25 + $0x2e0] sm:$0xff]  ;;  %1233 = vmatprep.subr.bf16.mxu1 %v979_v33  ;;  %v752_v29 = vld [vmem:[%s2119_s25 + $0x118] sm:$0xff] }
  0x65   : > { %v1977_v46 = vpop.eup %1976  ;;  %549 = vperm.xlu1 %1913, %v1963_v32   ;;  %v411_v47 = vadd.f32 1.0, %v1975_v45  ;;  %2002 = vpow2.f32 %v1852_v41  ;;  %v822_v32 = vld [vmem:[%s2119_s25 + $0x348] sm:$0xff]  ;;  %v811_v41 = vld [vmem:[%s2119_s25 + $0x2f0] sm:$0xff]  ;;  %v808_v45 = vld [vmem:[%s2119_s25 + $0x2d8] sm:$0xff] }
  0x66   : > { %v1979_v48 = vpop.eup %1978  ;;  %544 = vperm.xlu0 %1912, %v1965_v35   ;;  %v410_v49 = vadd.f32 1.0, %v1977_v46  ;;  %2004 = vpow2.f32 %v1851_v43  ;;  %v976_v34 = vpack.c.bf16 %v822_v32, %v815_v31  ;;  %v817_v35 = vld [vmem:[%s2119_s25 + $0x320] sm:$0xff]  ;;  %v803_v46 = vld [vmem:[%s2119_s25 + $0x2b0] sm:$0xff]  ;;  %v754_v32 = vld [vmem:[%s2119_s25 + $0x128] sm:$0xff] }
  0x67   : > { %v1981_v50 = vpop.eup %1980  ;;  %2006 = vrcp.f32 %v411_v47  ;;  %v427_v51 = vadd.f32 1.0, %v1979_v48  ;;  %v810_v48 = vld [vmem:[%s2119_s25 + $0x2e8] sm:$0xff]  ;;  %v732_v33 = vld [vmem:[%s2119_s25 + $0x78] sm:$0xff] }
  0x68   : > { %v1983_v52 = vpop.eup %1982  ;;  %2008 = vrcp.f32 %v410_v49  ;;  %v426_v53 = vadd.f32 1.0, %v1981_v50  ;;  %1151 = vmatpush1.bf16.msra.mxu0 %v976_v34  ;;  %v788_v49 = vld [vmem:[%s2119_s25 + $0x238] sm:$0xff]  ;;  %v795_v50 = vld [vmem:[%s2119_s25 + $0x270] sm:$0xff] }
  0x69   : > { %v1985_v54 = vpop.eup %1984  ;;  %629 = vperm.xlu1 %1913, %v1967_v38   ;;  %2010 = vrcp.f32 %v427_v51  ;;  %v413_v55 = vadd.f32 1.0, %v1983_v52  ;;  %v978_v38 = vpack.c.bf16 %v824_v36, %v817_v35  ;;  %v971_v51 = vpack.c.bf16 %v810_v48, %v803_v46  ;;  %v739_v34 = vld [vmem:[%s2119_s25 + $0xb0] sm:$0xff]  ;;  %v734_v35 = vld [vmem:[%s2119_s25 + $0x88] sm:$0xff]  ;;  %v741_v36 = vld [vmem:[%s2119_s25 + $0xc0] sm:$0xff] }
  0x6a   : > { %v1987_v56 = vpop.eup %1986  ;;  %624 = vperm.xlu0 %1912, %v1969_v40   ;;  %2012 = vrcp.f32 %v426_v53  ;;  %v412_v57 = vadd.f32 1.0, %v1985_v54  ;;  %v804_v40 = vld [vmem:[%s2119_s25 + $0x2b8] sm:$0xff]  ;;  %v963_v52 = vpack.c.bf16 %v795_v50, %v788_v49  ;;  %v790_v53 = vld [vmem:[%s2119_s25 + $0x248] sm:$0xff]  ;;  %v797_v54 = vld [vmem:[%s2119_s25 + $0x280] sm:$0xff] }
  0x6b   : > { %v1989_v58 = vpop.eup %1988  ;;  %2014 = vrcp.f32 %v413_v55  ;;  %v429_v61 = vadd.f32 1.0, %v1987_v56  ;;  %v972_v43 = vpack.c.bf16 %v811_v41, %v804_v40  ;;  %1234 = vmatpush1.bf16.msra.mxu1 %v978_v38  ;;  %v787_v55 = vld [vmem:[%s2119_s25 + $0x230] sm:$0xff]  ;;  %v965_v56 = vpack.c.bf16 %v797_v54, %v790_v53  ;;  %v738_v41 = vld [vmem:[%s2119_s25 + $0xa8] sm:$0xff]  ;;  %v725_v46 = vld [vmem:[%s2119_s25 + $0x40] sm:$0xff] }
  0x6c   : > { %v1991_v59 = vpop.eup %1990  ;;  %2016 = vrcp.f32 %v412_v57  ;;  %v428_v63 = vadd.f32 1.0, %v1989_v58  ;;  %v794_v57 = vld [vmem:[%s2119_s25 + $0x268] sm:$0xff]  ;;  %v789_v58 = vld [vmem:[%s2119_s25 + $0x240] sm:$0xff]  ;;  %v943_v38 = vpack.c.bf16 %v754_v32, %v747_v30  ;;  %v731_v40 = vld [vmem:[%s2119_s25 + $0x70] sm:$0xff] }
  0x6d   : > { %v1993_v60 = vpop.eup %1992  ;;  %559 = vperm.xlu1 %1913, %v1971_v42   ;;  %2018 = vrcp.f32 %v429_v61  ;;  %v970_v42 = vpack.c.bf16 %v809_v39, %v802_v37  ;;  %1235 = vmatprep.subr.bf16.mxu1 %v972_v43  ;;  %v774_v61 = vld [vmem:[%s2119_s25 + $0x1c8] sm:$0xff]  ;;  %v941_v37 = vpack.c.bf16 %v752_v29, %v745_v28  ;;  %v935_v39 = vpack.c.bf16 %v739_v34, %v732_v33  ;;  %v727_v48 = vld [vmem:[%s2119_s25 + $0x50] sm:$0xff]  ;;  %v724_v53 = vld [vmem:[%s2119_s25 + $0x38] sm:$0xff] }
  0x6e   : > { %v1995_v62 = vpop.eup %1994  ;;  %554 = vperm.xlu0 %1912, %v1973_v44   ;;  %2020 = vrcp.f32 %v428_v63  ;;  %v801_v44 = vld [vmem:[%s2119_s25 + $0x2a0] sm:$0xff]  ;;  %v776_v63 = vld [vmem:[%s2119_s25 + $0x1d8] sm:$0xff]  ;;  %v937_v43 = vpack.c.bf16 %v741_v36, %v734_v35  ;;  %v934_v49 = vpack.c.bf16 %v738_v41, %v731_v40  ;;  %v719_v54 = vld [vmem:[%s2119_s25 + $0x10] sm:$0xff] }
  0x6f   : > { %v1997_v0 = vpop.eup %1996  ;;  %v415_v3 = vadd.f32 1.0, %v1995_v62  ;;  %v969_v47 = vpack.c.bf16 %v808_v45, %v801_v44  ;;  %1152 = vmatprep.subr.bf16.mxu0 %v970_v42  ;;  %v781_v62 = vld [vmem:[%s2119_s25 + $0x200] sm:$0xff]  ;;  %1236 = vmatpush1.bf16.msra.mxu1 %v971_v51  ;;  %v740_v44 = vld [vmem:[%s2119_s25 + $0xb8] sm:$0xff]  ;;  %v718_v45 = vld [vmem:[%s2119_s25 + $0x8] sm:$0xff] }
  0x70   : > { %v1999_v1 = vpop.eup %1998  ;;  %v414_v6 = vadd.f32 1.0, %v1997_v0  ;;  %1237 = vmatprep.subr.bf16.mxu1 %v965_v56  ;;  %v733_v42 = vld [vmem:[%s2119_s25 + $0x80] sm:$0xff]  ;;  %v928_v51 = vpack.c.bf16 %v725_v46, %v718_v45  ;;  %v726_v56 = vld [vmem:[%s2119_s25 + $0x48] sm:$0xff]  ;;  %v872_v30 = vld [vmem:[%s2119_s25 + $0x4d8] sm:$0xff] }
  0x71   : > { %v2001_v2 = vpop.eup %2000  ;;  %639 = vperm.xlu1 %1913, %v1991_v59   ;;  %2022 = vrcp.f32 %v415_v3  ;;  %v431_v10 = vadd.f32 1.0, %v1999_v1  ;;  %v796_v59 = vld [vmem:[%s2119_s25 + $0x278] sm:$0xff]  ;;  %1153 = vmatpush1.bf16.msra.mxu0 %v969_v47  ;;  %v956_v1 = vpack.c.bf16 %v781_v62, %v774_v61  ;;  %v773_v3 = vld [vmem:[%s2119_s25 + $0x1c0] sm:$0xff]  ;;  %v936_v50 = vpack.c.bf16 %v740_v44, %v733_v42  ;;  %v894_v29 = vld [vmem:[%s2119_s25 + $0x588] sm:$0xff] }
  0x72   : > { %v2003_v5 = vpop.eup %2002  ;;  %634 = vperm.xlu0 %1912, %v1993_v60   ;;  %2024 = vrcp.f32 %v414_v6  ;;  %v430_v12 = vadd.f32 1.0, %v2001_v2  ;;  %v962_v60 = vpack.c.bf16 %v794_v57, %v787_v55  ;;  %1154 = vmatprep.subr.bf16.mxu0 %v963_v52  ;;  %v964_v0 = vpack.c.bf16 %v796_v59, %v789_v58  ;;  %v783_v2 = vld [vmem:[%s2119_s25 + $0x210] sm:$0xff]  ;;  %v720_v47 = vld [vmem:[%s2119_s25 + $0x18] sm:$0xff]  ;;  %v717_v52 = vld [vmem:[%s2119_s25] sm:$0xff] }
  0x73   : > { %v2005_v7 = vpop.eup %2004  ;;  %2026 = vrcp.f32 %v431_v10  ;;  %v417_v14 = vadd.f32 1.0, %v2003_v5  ;;  %v780_v5 = vld [vmem:[%s2119_s25 + $0x1f8] sm:$0xff]  ;;  %v958_v6 = vpack.c.bf16 %v783_v2, %v776_v63  ;;  %v767_v10 = vld [vmem:[%s2119_s25 + $0x190] sm:$0xff]  ;;  %v930_v55 = vpack.c.bf16 %v727_v48, %v720_v47  ;;  %v914_v57 = vld [vmem:[%s2119_s25 + $0x628] sm:$0xff] }
  0x74   : > { %v2007_v8 = vpop.eup %2006  ;;  %2028 = vrcp.f32 %v430_v12  ;;  %v416_v16 = vadd.f32 1.0, %v2005_v7  ;;  %v775_v7 = vld [vmem:[%s2119_s25 + $0x1d0] sm:$0xff]  ;;  %v769_v12 = vld [vmem:[%s2119_s25 + $0x1a0] sm:$0xff]  ;;  %1238 = vmatpush1.bf16.msra.mxu1 %v964_v0  ;;  %v916_v59 = vld [vmem:[%s2119_s25 + $0x638] sm:$0xff]  ;;  %v927_v61 = vpack.c.bf16 %v724_v53, %v717_v52  ;;  %v929_v62 = vpack.c.bf16 %v726_v56, %v719_v54 }
  0x75   : > { %v2009_v9 = vpop.eup %2008  ;;  %569 = vperm.xlu1 %1913, %v2007_v8   ;;  %2030 = vrcp.f32 %v417_v14  ;;  %v782_v8 = vld [vmem:[%s2119_s25 + $0x208] sm:$0xff]  ;;  %1155 = vmatpush1.bf16.msra.mxu0 %v962_v60  ;;  %v921_v58 = vld [vmem:[%s2119_s25 + $0x660] sm:$0xff]  ;;  %v923_v60 = vld [vmem:[%s2119_s25 + $0x670] sm:$0xff] }
  0x76   : > { %v2011_v11 = vpop.eup %2010  ;;  %564 = vperm.xlu0 %1912, %v2009_v9   ;;  %2032 = vrcp.f32 %v416_v16  ;;  %v760_v9 = vld [vmem:[%s2119_s25 + $0x158] sm:$0xff]  ;;  %1156 = vmatprep.subr.bf16.mxu0 %v956_v1  ;;  %v957_v14 = vpack.c.bf16 %v782_v8, %v775_v7  ;;  %v759_v16 = vld [vmem:[%s2119_s25 + $0x150] sm:$0xff]  ;;  %v1026_v63 = vpack.c.bf16 %v921_v58, %v914_v57  ;;  %v913_v0 = vld [vmem:[%s2119_s25 + $0x620] sm:$0xff] }
  0x77   : > { %v2013_v13 = vpop.eup %2012  ;;  %1239 = vmatprep.subr.bf16.mxu1 %v958_v6  ;;  %v920_v1 = vld [vmem:[%s2119_s25 + $0x658] sm:$0xff]  ;;  %v915_v2 = vld [vmem:[%s2119_s25 + $0x630] sm:$0xff]  ;;  %v902_v8 = vld [vmem:[%s2119_s25 + $0x5c8] sm:$0xff] }
  0x78   : > { %v2015_v15 = vpop.eup %2014  ;;  %1240 = vmatpush1.bf16.msra.mxu1 %v957_v14  ;;  %v900_v6 = vld [vmem:[%s2119_s25 + $0x5b8] sm:$0xff]  ;;  %v907_v7 = vld [vmem:[%s2119_s25 + $0x5f0] sm:$0xff]  ;;  %v906_v14 = vld [vmem:[%s2119_s25 + $0x5e8] sm:$0xff] }
  0x79   : > { %649 = vperm.xlu1 %1913, %v2011_v11   ;;  %v2017_v17 = vpop.eup %2016  ;;  %v762_v11 = vld [vmem:[%s2119_s25 + $0x168] sm:$0xff]  ;;  %v881_v33 = vld [vmem:[%s2119_s25 + $0x520] sm:$0xff]  ;;  %v880_v41 = vld [vmem:[%s2119_s25 + $0x518] sm:$0xff] }
  0x7a   : > { %644 = vperm.xlu0 %1912, %v2013_v13   ;;  %v2019_v18 = vpop.eup %2018  ;;  %v955_v13 = vpack.c.bf16 %v780_v5, %v773_v3  ;;  %v1028_v3 = vpack.c.bf16 %v923_v60, %v916_v59  ;;  %v922_v5 = vld [vmem:[%s2119_s25 + $0x668] sm:$0xff]  ;;  %v860_v44 = vld [vmem:[%s2119_s25 + $0x478] sm:$0xff]  ;;  %v867_v45 = vld [vmem:[%s2119_s25 + $0x4b0] sm:$0xff] }
  0x7b   : > { %v2021_v19 = vpop.eup %2020  ;;  %v874_v32 = vld [vmem:[%s2119_s25 + $0x4e8] sm:$0xff]  ;;  %v1000_v52 = vpack.c.bf16 %v867_v45, %v860_v44  ;;  %v844_v54 = vld [vmem:[%s2119_s25 + $0x3f8] sm:$0xff]  ;;  %v853_v57 = vld [vmem:[%s2119_s25 + $0x440] sm:$0xff] }
  0x7c   : > { %1157 = vmatpush1.bf16.msra.mxu0 %v955_v13  ;;  %v899_v13 = vld [vmem:[%s2119_s25 + $0x5b0] sm:$0xff]  ;;  %v1007_v40 = vpack.c.bf16 %v881_v33, %v874_v32  ;;  %v858_v42 = vld [vmem:[%s2119_s25 + $0x468] sm:$0xff]  ;;  %v495_v32 = vld [vmem:[%s2114_s22 + $0x18] sm:$0xff] }
  0x7d   : > { %579 = vperm.xlu1 %1913, %v2015_v15   ;;  %v949_v15 = vpack.c.bf16 %v767_v10, %v760_v9  ;;  %v909_v9 = vld [vmem:[%s2119_s25 + $0x600] sm:$0xff]  ;;  %v1025_v10 = vpack.c.bf16 %v920_v1, %v913_v0  ;;  %v866_v53 = vld [vmem:[%s2119_s25 + $0x4a8] sm:$0xff]  ;;  %v852_v1 = vld [vmem:[%s2119_s25 + $0x438] sm:$0xff] }
  0x7e   : > { %574 = vperm.xlu0 %1912, %v2017_v17   ;;  %v2023_v20 = vpop.eup %2022  ;;  %v766_v17 = vld [vmem:[%s2119_s25 + $0x188] sm:$0xff] }
  0x7f   : > { %v2025_v21 = vpop.eup %2024  ;;  %1158 = vmatprep.subr.bf16.mxu0 %v949_v15  ;;  %v901_v15 = vld [vmem:[%s2119_s25 + $0x5c0] sm:$0xff]  ;;  %v846_v56 = vld [vmem:[%s2119_s25 + $0x408] sm:$0xff] }
  0x80   : > { %v2027_v22 = vpop.eup %2026  ;;  %v993_v0 = vpack.c.bf16 %v853_v57, %v846_v56 }
  0x81   : > { %659 = vperm.xlu1 %1913, %v2019_v18   ;;  %v2029_v23 = vpop.eup %2028  ;;  %v761_v18 = vld [vmem:[%s2119_s25 + $0x160] sm:$0xff] }
  0x82   : > { %654 = vperm.xlu0 %1912, %v2021_v19   ;;  %v2031_v24 = vpop.eup %2030  ;;  %v951_v19 = vpack.c.bf16 %v769_v12, %v762_v11  ;;  %v1027_v11 = vpack.c.bf16 %v922_v5, %v915_v2  ;;  %v1019_v12 = vpack.c.bf16 %v907_v7, %v900_v6  ;;  %v830_v2 = vld [vmem:[%s2119_s25 + $0x388] sm:$0xff]  ;;  %v832_v5 = vld [vmem:[%s2119_s25 + $0x398] sm:$0xff]  ;;  %v839_v6 = vld [vmem:[%s2119_s25 + $0x3d0] sm:$0xff] }
  0x83   : > { %v2033_v25 = vpop.eup %2032 }
  0x84   : > { %1241 = vmatprep.subr.bf16.mxu1 %v951_v19  ;;  %v893_v19 = vld [vmem:[%s2119_s25 + $0x580] sm:$0xff] }
  0x85   : > { %589 = vperm.xlu1 %1913, %v2023_v20   ;;  %v768_v20 = vld [vmem:[%s2119_s25 + $0x198] sm:$0xff] }
  0x86   : > { %584 = vperm.xlu0 %1912, %v2025_v21   ;;  %v746_v21 = vld [vmem:[%s2119_s25 + $0xe8] sm:$0xff]  ;;  %v950_v26 = vpack.c.bf16 %v768_v20, %v761_v18  ;;  %v888_v20 = vld [vmem:[%s2119_s25 + $0x558] sm:$0xff] }
  0x87   : > { %v886_v18 = vld [vmem:[%s2119_s25 + $0x548] sm:$0xff] }
  0x88   : > { %1242 = vmatpush1.bf16.msra.mxu1 %v950_v26  ;;  %v892_v26 = vld [vmem:[%s2119_s25 + $0x578] sm:$0xff] }
  0x89   : > { %669 = vperm.xlu1 %1913, %v2027_v22   ;;  %v753_v22 = vld [vmem:[%s2119_s25 + $0x120] sm:$0xff] }
  0x8a   : > { %664 = vperm.xlu0 %1912, %v2029_v23   ;;  %v748_v23 = vld [vmem:[%s2119_s25 + $0xf8] sm:$0xff]  ;;  %v942_v27 = vpack.c.bf16 %v753_v22, %v746_v21  ;;  %v895_v21 = vld [vmem:[%s2119_s25 + $0x590] sm:$0xff]  ;;  %v1018_v22 = vpack.c.bf16 %v906_v14, %v899_v13  ;;  %v838_v14 = vld [vmem:[%s2119_s25 + $0x3c8] sm:$0xff] }
  0x8b   : > { %v1014_v28 = vpack.c.bf16 %v895_v21, %v888_v20  ;;  %v831_v13 = vld [vmem:[%s2119_s25 + $0x390] sm:$0xff]  ;;  %v509_v20 = vld [vmem:[%s2114_s22 + $0x88] sm:$0xff]  ;;  %v820_v21 = vld [vmem:[%s2119_s25 + $0x338] sm:$0xff] }
  0x8d   : > { %599 = vperm.xlu1 %1913, %v2031_v24   ;;  %v755_v24 = vld [vmem:[%s2119_s25 + $0x130] sm:$0xff] }
  0x8e   : > { %594 = vperm.xlu0 %1912, %v2033_v25   ;;  %v948_v25 = vpack.c.bf16 %v766_v17, %v759_v16  ;;  %v944_v31 = vpack.c.bf16 %v755_v24, %v748_v23  ;;  %v1021_v16 = vpack.c.bf16 %v909_v9, %v902_v8  ;;  %v908_v17 = vld [vmem:[%s2119_s25 + $0x5f8] sm:$0xff]  ;;  %v1012_v24 = vpack.c.bf16 %v893_v19, %v886_v18  ;;  %v508_v18 = vld [vmem:[%s2114_s22 + $0x80] sm:$0xff] }
  0x8f   : > { %v1020_v23 = vpack.c.bf16 %v908_v17, %v901_v15 }
  0x90   : > { %1159 = vmatpush1.bf16.msra.mxu0 %v948_v25  ;;  %1243 = vmatprep.subr.bf16.mxu1 %v944_v31  ;;  %v885_v25 = vld [vmem:[%s2119_s25 + $0x540] sm:$0xff]  ;;  %v879_v31 = vld [vmem:[%s2119_s25 + $0x510] sm:$0xff] }
  0x91   : > { %1160 = vmatprep.subr.bf16.mxu0 %v942_v27  ;;  %1244 = vmatpush1.bf16.msra.mxu1 %v943_v38  ;;  %v887_v27 = vld [vmem:[%s2119_s25 + $0x550] sm:$0xff]  ;;  %v1011_v34 = vpack.c.bf16 %v892_v26, %v885_v25  ;;  %v1005_v36 = vpack.c.bf16 %v879_v31, %v872_v30  ;;  %v878_v38 = vld [vmem:[%s2119_s25 + $0x508] sm:$0xff] }
  0x92   : > { %1245 = vmatprep.subr.bf16.mxu1 %v937_v43  ;;  %v1013_v35 = vpack.c.bf16 %v894_v29, %v887_v27  ;;  %v865_v43 = vld [vmem:[%s2119_s25 + $0x4a0] sm:$0xff] }
  0x93   : > { %v998_v48 = vpack.c.bf16 %v865_v43, %v858_v42 }
  0x94   : > { %1161 = vmatpush1.bf16.msra.mxu0 %v941_v37  ;;  %v871_v37 = vld [vmem:[%s2119_s25 + $0x4d0] sm:$0xff] }
  0x95   : > { %1162 = vmatprep.subr.bf16.mxu0 %v935_v39  ;;  %1246 = vmatpush1.bf16.msra.mxu1 %v936_v50  ;;  %v873_v39 = vld [vmem:[%s2119_s25 + $0x4e0] sm:$0xff]  ;;  %v1004_v46 = vpack.c.bf16 %v878_v38, %v871_v37  ;;  %v864_v50 = vld [vmem:[%s2119_s25 + $0x498] sm:$0xff] }
  0x96   : > { %1247 = vmatprep.subr.bf16.mxu1 %v930_v55  ;;  %v1006_v47 = vpack.c.bf16 %v880_v41, %v873_v39  ;;  %v851_v55 = vld [vmem:[%s2119_s25 + $0x430] sm:$0xff] }
  0x97   : > { %v991_v60 = vpack.c.bf16 %v851_v55, %v844_v54  ;;  %v510_v41 = vld [vmem:[%s2114_s22 + $0x90] sm:$0xff]  ;;  %v513_v54 = vld [vmem:[%s2114_s22 + $0xa8] sm:$0xff]  ;;  %v512_v55 = vld [vmem:[%s2114_s22 + $0xa0] sm:$0xff] }
  0x98   : > { %1163 = vmatpush1.bf16.msra.mxu0 %v934_v49  ;;  %v857_v49 = vld [vmem:[%s2119_s25 + $0x460] sm:$0xff] }
  0x99   : > { %1164 = vmatprep.subr.bf16.mxu0 %v928_v51  ;;  %1248 = vmatpush1.bf16.msra.mxu1 %v929_v62  ;;  %v859_v51 = vld [vmem:[%s2119_s25 + $0x470] sm:$0xff]  ;;  %v997_v58 = vpack.c.bf16 %v864_v50, %v857_v49  ;;  %v850_v62 = vld [vmem:[%s2119_s25 + $0x428] sm:$0xff] }
  0x9a   : > { %1251 = vmatprep.subr.bf16.mxu1 %v1028_v3  ;;  %v999_v59 = vpack.c.bf16 %v866_v53, %v859_v51  ;;  %v837_v3 = vld [vmem:[%s2119_s25 + $0x3c0] sm:$0xff] }
  0x9b   : > { %v984_v9 = vpack.c.bf16 %v837_v3, %v830_v2 }
  0x9c   : > { %1165 = vmatpush1.bf16.msra.mxu0 %v927_v61  ;;  %v843_v61 = vld [vmem:[%s2119_s25 + $0x3f0] sm:$0xff] }
  0x9d   : > { %1168 = vmatprep.subr.bf16.mxu0 %v1026_v63  ;;  %1252 = vmatpush2.bf16.msra.mxu1 %v1027_v11  ;;  %v845_v63 = vld [vmem:[%s2119_s25 + $0x400] sm:$0xff]  ;;  %v990_v7 = vpack.c.bf16 %v850_v62, %v843_v61  ;;  %v836_v11 = vld [vmem:[%s2119_s25 + $0x3b8] sm:$0xff]  ;;  %v498_v62 = vld [vmem:[%s2114_s22 + $0x30] sm:$0xff] }
  0x9e   : > { %1253 = vmatprep.subr.bf16.mxu1 %v1021_v16  ;;  %v992_v8 = vpack.c.bf16 %v852_v1, %v845_v63  ;;  %v985_v16 = vpack.c.bf16 %v838_v14, %v831_v13  ;;  %v499_v61 = vld [vmem:[%s2114_s22 + $0x38] sm:$0xff]  ;;  %v500_v13 = vld [vmem:[%s2114_s22 + $0x40] sm:$0xff] }
  0xa0   : > { %1169 = vmatpush2.bf16.msra.mxu0 %v1025_v10  ;;  %v829_v10 = vld [vmem:[%s2119_s25 + $0x380] sm:$0xff] }
  0xa1   : > { %1170 = vmatprep.subr.bf16.mxu0 %v1019_v12  ;;  %1254 = vmatpush2.bf16.msra.mxu1 %v1020_v23  ;;  %v986_v12 = vpack.c.bf16 %v839_v6, %v832_v5  ;;  %v983_v15 = vpack.c.bf16 %v836_v11, %v829_v10  ;;  %v492_v23 = vld [vmem:[%s2114_s22] sm:$0xff]  ;;  %v515_v5 = vld [vmem:[%s2114_s22 + $0xb8] sm:$0xff]  ;;  %v514_v6 = vld [vmem:[%s2114_s22 + $0xb0] sm:$0xff] }
  0xa2   : > { %1255 = vmatprep.subr.bf16.mxu1 %v1014_v28 }
  0xa4   : > { %1171 = vmatpush2.bf16.msra.mxu0 %v1018_v22  ;;  %v827_v22 = vld [vmem:[%s2119_s25 + $0x370] sm:$0xff] }
  0xa5   : > { %1172 = vmatprep.subr.bf16.mxu0 %v1012_v24  ;;  %1256 = vmatpush2.bf16.msra.mxu1 %v1013_v35  ;;  %v493_v24 = vld [vmem:[%s2114_s22 + $0x8] sm:$0xff]  ;;  %v981_v25 = vpack.c.bf16 %v827_v22, %v820_v21 }
  0xa6   : > { %1257 = vmatprep.subr.bf16.mxu1 %v1007_v40  ;;  %v511_v40 = vld [vmem:[%s2114_s22 + $0x98] sm:$0xff] }
  0xa8   : > { %1173 = vmatpush2.bf16.msra.mxu0 %v1011_v34  ;;  %v494_v34 = vld [vmem:[%s2114_s22 + $0x10] sm:$0xff] }
  0xa9   : > { %1174 = vmatprep.subr.bf16.mxu0 %v1005_v36  ;;  %1258 = vmatpush2.bf16.msra.mxu1 %v1006_v47  ;;  %v497_v47 = vld [vmem:[%s2114_s22 + $0x28] sm:$0xff] }
  0xaa   : > { %1259 = vmatprep.subr.bf16.mxu1 %v1000_v52 }
  0xac   : > { %1175 = vmatpush2.bf16.msra.mxu0 %v1004_v46 }
  0xad   : > { %1176 = vmatprep.subr.bf16.mxu0 %v998_v48  ;;  %1260 = vmatpush2.bf16.msra.mxu1 %v999_v59  ;;  %v496_v48 = vld [vmem:[%s2114_s22 + $0x20] sm:$0xff] }
  0xae   : > { %1261 = vmatprep.subr.bf16.mxu1 %v993_v0 }
  0xb0   : > { %1177 = vmatpush2.bf16.msra.mxu0 %v997_v58 }
  0xb1   : > { %1178 = vmatprep.subr.bf16.mxu0 %v991_v60  ;;  %1262 = vmatpush2.bf16.msra.mxu1 %v992_v8 }
  0xb2   : > { %1263 = vmatprep.subr.bf16.mxu1 %v986_v12  ;;  %v501_v12 = vld [vmem:[%s2114_s22 + $0x48] sm:$0xff] }
  0xb4   : > { %1179 = vmatpush2.bf16.msra.mxu0 %v990_v7 }
  0xb5   : > { %1180 = vmatprep.subr.bf16.mxu0 %v984_v9  ;;  %1264 = vmatpush2.bf16.msra.mxu1 %v985_v16 }
  0xb6   : > { %1399 = vmatprep.subr.bf16.mxu1 %v2071_v4 }
  0xb8   : > { %1181 = vmatpush2.bf16.msra.mxu0 %v983_v15 }
  0xb9   : > { %1316 = vmatprep.subr.bf16.mxu0 %v981_v25 }
  0xd0   : > { %v605_v17 = vpop.permute.xlu1 %604 }
  0xd1   : > { %v525_v19 = vpop.permute.xlu0 %524  ;;  %v688_v27 = vmul.f32 %v605_v17, %v508_v18 }
  0xd2   : > { %v672_v30 = vmul.f32 %v525_v19, %v492_v23  ;;  %v517_v19 = vld [vmem:[%s2114_s22 + $0xc8] sm:$0xff] }
  0xd4   : > { %v610_v26 = vpop.permute.xlu1 %609 }
  0xd5   : > { %v689_v28 = vmul.f32 %v610_v26, %v509_v20  ;;  %v530_v29 = vpop.permute.xlu0 %529  ;;  %v516_v20 = vld [vmem:[%s2114_s22 + $0xc0] sm:$0xff]  ;;  %v503_v26 = vld [vmem:[%s2114_s22 + $0x58] sm:$0xff] }
  0xd6   : > { %v673_v31 = vmul.f32 %v530_v29, %v493_v24 }
  0xd7   : > { %v710_v33 = vpack.c.bf16 %v689_v28, %v688_v27  ;;  %v502_v27 = vld [vmem:[%s2114_s22 + $0x50] sm:$0xff] }
  0xd8   : > { %v702_v35 = vpack.c.bf16 %v673_v31, %v672_v30  ;;  %v540_v36 = vpop.permute.xlu1 %539 }
  0xd9   : > { %v675_v37 = vmul.f32 %v540_v36, %v495_v32  ;;  %v535_v38 = vpop.permute.xlu0 %534  ;;  %1118 = vxpose.xlu0.c.b16.start [1/7] (short) (narrow) %v710_v33, 80  ;;  %v519_v33 = vld [vmem:[%s2114_s22 + $0xd8] sm:$0xff] }
  0xda   : > { %v674_v39 = vmul.f32 %v535_v38, %v494_v34  ;;  %1102 = vxpose.xlu1.c.b16.start [1/8] (narrow) %v702_v35, 80  ;;  %v518_v34 = vld [vmem:[%s2114_s22 + $0xd0] sm:$0xff] }
  0xdc   : > { %v703_v42 = vpack.c.bf16 %v675_v37, %v674_v39  ;;  %v620_v43 = vpop.permute.xlu1 %619 }
  0xdd   : > { %v691_v44 = vmul.f32 %v620_v43, %v511_v40  ;;  %v615_v45 = vpop.permute.xlu0 %614  ;;  %v505_v40 = vld [vmem:[%s2114_s22 + $0x68] sm:$0xff] }
  0xde   : > { %v690_v46 = vmul.f32 %v615_v45, %v510_v41  ;;  %1103 = vxpose.xlu1.c.b16.cont [2/8] (narrow) %v703_v42, 80  ;;  %v504_v41 = vld [vmem:[%s2114_s22 + $0x60] sm:$0xff] }
  0xe0   : > { %v711_v49 = vpack.c.bf16 %v691_v44, %v690_v46  ;;  %v550_v50 = vpop.permute.xlu1 %549 }
  0xe1   : > { %v677_v51 = vmul.f32 %v550_v50, %v497_v47  ;;  %v545_v52 = vpop.permute.xlu0 %544  ;;  %v521_v47 = vld [vmem:[%s2114_s22 + $0xe8] sm:$0xff] }
  0xe2   : > { %v676_v53 = vmul.f32 %v545_v52, %v496_v48  ;;  %1119 = vxpose.xlu0.c.b16.cont [2/7] (short) (narrow) %v711_v49, 80  ;;  %v520_v48 = vld [vmem:[%s2114_s22 + $0xe0] sm:$0xff] }
  0xe4   : > { %v704_v56 = vpack.c.bf16 %v677_v51, %v676_v53  ;;  %v630_v57 = vpop.permute.xlu1 %629 }
  0xe5   : > { %v693_v58 = vmul.f32 %v630_v57, %v513_v54  ;;  %v625_v59 = vpop.permute.xlu0 %624  ;;  %v507_v54 = vld [vmem:[%s2114_s22 + $0x78] sm:$0xff] }
  0xe6   : > { %v692_v60 = vmul.f32 %v625_v59, %v512_v55  ;;  %1104 = vxpose.xlu1.c.b16.cont [3/8] (narrow) %v704_v56, 80  ;;  %v506_v55 = vld [vmem:[%s2114_s22 + $0x70] sm:$0xff] }
  0xe8   : > { %v712_v63 = vpack.c.bf16 %v693_v58, %v692_v60  ;;  %v560_v0 = vpop.permute.xlu1 %559 }
  0xe9   : > { %v679_v1 = vmul.f32 %v560_v0, %v499_v61  ;;  %v555_v2 = vpop.permute.xlu0 %554  ;;  %v821_v0 = vld [vmem:[%s2119_s25 + $0x340] sm:$0xff] }
  0xea   : > { %v678_v3 = vmul.f32 %v555_v2, %v498_v62  ;;  %1120 = vxpose.xlu0.c.b16.cont [3/7] (short) (narrow) %v712_v63, 80  ;;  %v819_v62 = vld [vmem:[%s2119_s25 + $0x330] sm:$0xff]  ;;  %v826_v63 = vld [vmem:[%s2119_s25 + $0x368] sm:$0xff] }
  0xeb   : > { %v806_v2 = vld [vmem:[%s2119_s25 + $0x2c8] sm:$0xff] }
  0xec   : > { %v705_v7 = vpack.c.bf16 %v679_v1, %v678_v3  ;;  %v640_v8 = vpop.permute.xlu1 %639  ;;  %v828_v1 = vld [vmem:[%s2119_s25 + $0x378] sm:$0xff]  ;;  %v813_v3 = vld [vmem:[%s2119_s25 + $0x300] sm:$0xff] }
  0xed   : > { %v695_v9 = vmul.f32 %v640_v8, %v515_v5  ;;  %v635_v10 = vpop.permute.xlu0 %634  ;;  %v980_v5 = vpack.c.bf16 %v826_v63, %v819_v62  ;;  %v737_v62 = vld [vmem:[%s2119_s25 + $0xa0] sm:$0xff]  ;;  %v744_v63 = vld [vmem:[%s2119_s25 + $0xd8] sm:$0xff] }
  0xee   : > { %v694_v11 = vmul.f32 %v635_v10, %v514_v6  ;;  %1105 = vxpose.xlu1.c.b16.cont [4/8] (narrow) %v705_v7, 80  ;;  %v982_v6 = vpack.c.bf16 %v828_v1, %v821_v0  ;;  %v805_v7 = vld [vmem:[%s2119_s25 + $0x2c0] sm:$0xff]  ;;  %v974_v10 = vpack.c.bf16 %v813_v3, %v806_v2  ;;  %v722_v0 = vld [vmem:[%s2119_s25 + $0x28] sm:$0xff] }
  0xef   : > { %v729_v1 = vld [vmem:[%s2119_s25 + $0x60] sm:$0xff] }
  0xf0   : > { %v713_v14 = vpack.c.bf16 %v695_v9, %v694_v11  ;;  %v570_v15 = vpop.permute.xlu1 %569  ;;  %v812_v11 = vld [vmem:[%s2119_s25 + $0x2f8] sm:$0xff] }
  0xf1   : > { %v681_v16 = vmul.f32 %v570_v15, %v501_v12  ;;  %v565_v17 = vpop.permute.xlu0 %564  ;;  %v807_v12 = vld [vmem:[%s2119_s25 + $0x2d0] sm:$0xff] }
  0xf2   : > { %v680_v18 = vmul.f32 %v565_v17, %v500_v13  ;;  %1121 = vxpose.xlu0.c.b16.cont [4/7] (short) (narrow) %v713_v14, 80  ;;  %v814_v13 = vld [vmem:[%s2119_s25 + $0x308] sm:$0xff]  ;;  %v792_v14 = vld [vmem:[%s2119_s25 + $0x258] sm:$0xff]  ;;  %v799_v15 = vld [vmem:[%s2119_s25 + $0x290] sm:$0xff] }
  0xf3   : > { %v975_v17 = vpack.c.bf16 %v814_v13, %v807_v12  ;;  %v730_v12 = vld [vmem:[%s2119_s25 + $0x68] sm:$0xff] }
  0xf4   : > { %v706_v21 = vpack.c.bf16 %v681_v16, %v680_v18  ;;  %v650_v22 = vpop.permute.xlu1 %649  ;;  %v973_v16 = vpack.c.bf16 %v812_v11, %v805_v7  ;;  %v791_v18 = vld [vmem:[%s2119_s25 + $0x250] sm:$0xff]  ;;  %v932_v7 = vpack.c.bf16 %v729_v1, %v722_v0  ;;  %v918_v13 = vld [vmem:[%s2119_s25 + $0x648] sm:$0xff]  ;;  %v848_v0 = vld [vmem:[%s2119_s25 + $0x418] sm:$0xff] }
  0xf5   : > { %v697_v23 = vmul.f32 %v650_v22, %v517_v19  ;;  %v645_v24 = vpop.permute.xlu0 %644  ;;  %v793_v22 = vld [vmem:[%s2119_s25 + $0x260] sm:$0xff]  ;;  %v723_v11 = vld [vmem:[%s2119_s25 + $0x30] sm:$0xff] }
  0xf6   : > { %v696_v25 = vmul.f32 %v645_v24, %v516_v20  ;;  %1106 = vxpose.xlu1.c.b16.cont [5/8] (narrow) %v706_v21, 80  ;;  %v967_v20 = vpack.c.bf16 %v799_v15, %v792_v14  ;;  %v798_v21 = vld [vmem:[%s2119_s25 + $0x288] sm:$0xff]  ;;  %v925_v14 = vld [vmem:[%s2119_s25 + $0x680] sm:$0xff]  ;;  %v855_v1 = vld [vmem:[%s2119_s25 + $0x450] sm:$0xff] }
  0xf7   : > { %v778_v24 = vld [vmem:[%s2119_s25 + $0x1e8] sm:$0xff] }
  0xf8   : > { %v714_v28 = vpack.c.bf16 %v697_v23, %v696_v25  ;;  %v580_v29 = vpop.permute.xlu1 %579  ;;  %v800_v23 = vld [vmem:[%s2119_s25 + $0x298] sm:$0xff]  ;;  %v785_v25 = vld [vmem:[%s2119_s25 + $0x220] sm:$0xff] }
  0xf9   : > { %v683_v30 = vmul.f32 %v580_v29, %v503_v26  ;;  %v575_v31 = vpop.permute.xlu0 %574  ;;  %v777_v29 = vld [vmem:[%s2119_s25 + $0x1e0] sm:$0xff] }
  0xfa   : > { %v682_v32 = vmul.f32 %v575_v31, %v502_v27  ;;  %1122 = vxpose.xlu0.c.b16.cont [5/7] (short) (narrow) %v714_v28, 80  ;;  %v966_v27 = vpack.c.bf16 %v798_v21, %v791_v18  ;;  %v968_v28 = vpack.c.bf16 %v800_v23, %v793_v22  ;;  %v784_v31 = vld [vmem:[%s2119_s25 + $0x218] sm:$0xff]  ;;  %v917_v18 = vld [vmem:[%s2119_s25 + $0x640] sm:$0xff]  ;;  %v919_v22 = vld [vmem:[%s2119_s25 + $0x650] sm:$0xff] }
  0xfb   : > { %v924_v21 = vld [vmem:[%s2119_s25 + $0x678] sm:$0xff]  ;;  %v926_v23 = vld [vmem:[%s2119_s25 + $0x688] sm:$0xff] }
  0xfc   : > { %v707_v35 = vpack.c.bf16 %v683_v30, %v682_v32  ;;  %v660_v36 = vpop.permute.xlu1 %659  ;;  %v960_v30 = vpack.c.bf16 %v785_v25, %v778_v24  ;;  %v779_v32 = vld [vmem:[%s2119_s25 + $0x1f0] sm:$0xff]  ;;  %v904_v24 = vld [vmem:[%s2119_s25 + $0x5d8] sm:$0xff] }
  0xfd   : > { %v699_v37 = vmul.f32 %v660_v36, %v519_v33  ;;  %v655_v38 = vpop.permute.xlu0 %654  ;;  %v786_v33 = vld [vmem:[%s2119_s25 + $0x228] sm:$0xff]  ;;  %v911_v25 = vld [vmem:[%s2119_s25 + $0x610] sm:$0xff] }
  0xfe   : > { %v698_v39 = vmul.f32 %v655_v38, %v518_v34  ;;  %1107 = vxpose.xlu1.c.b16.cont [6/8] (narrow) %v707_v35, 80  ;;  %v764_v34 = vld [vmem:[%s2119_s25 + $0x178] sm:$0xff]  ;;  %v771_v35 = vld [vmem:[%s2119_s25 + $0x1b0] sm:$0xff]  ;;  %v961_v38 = vpack.c.bf16 %v786_v33, %v779_v32  ;;  %v905_v32 = vld [vmem:[%s2119_s25 + $0x5e0] sm:$0xff] }
  0xff   : > { %v912_v33 = vld [vmem:[%s2119_s25 + $0x618] sm:$0xff] }
 0x100   : > { %v715_v42 = vpack.c.bf16 %v699_v37, %v698_v39  ;;  %v590_v43 = vpop.permute.xlu1 %589  ;;  %v959_v37 = vpack.c.bf16 %v784_v31, %v777_v29  ;;  %v763_v39 = vld [vmem:[%s2119_s25 + $0x170] sm:$0xff]  ;;  %v1031_v29 = vpack.c.bf16 %v926_v23, %v919_v22  ;;  %v910_v31 = vld [vmem:[%s2119_s25 + $0x608] sm:$0xff] }
 0x101   : > { %v685_v44 = vmul.f32 %v590_v43, %v505_v40  ;;  %v585_v45 = vpop.permute.xlu0 %584  ;;  %v953_v40 = vpack.c.bf16 %v771_v35, %v764_v34  ;;  %v772_v43 = vld [vmem:[%s2119_s25 + $0x1b8] sm:$0xff]  ;;  %v1023_v34 = vpack.c.bf16 %v911_v25, %v904_v24  ;;  %v890_v35 = vld [vmem:[%s2119_s25 + $0x568] sm:$0xff]  ;;  %v835_v22 = vld [vmem:[%s2119_s25 + $0x3b0] sm:$0xff] }
 0x102   : > { %v684_v46 = vmul.f32 %v585_v45, %v504_v41  ;;  %1123 = vxpose.xlu0.c.b16.cont [6/7] (short) (narrow) %v715_v42, 80  ;;  %v770_v41 = vld [vmem:[%s2119_s25 + $0x1a8] sm:$0xff]  ;;  %v765_v42 = vld [vmem:[%s2119_s25 + $0x180] sm:$0xff] }
 0x103   : > { %v757_v45 = vld [vmem:[%s2119_s25 + $0x140] sm:$0xff]  ;;  %v842_v23 = vld [vmem:[%s2119_s25 + $0x3e8] sm:$0xff] }
 0x104   : > { %v708_v49 = vpack.c.bf16 %v685_v44, %v684_v46  ;;  %v670_v50 = vpop.permute.xlu1 %669  ;;  %v750_v44 = vld [vmem:[%s2119_s25 + $0x108] sm:$0xff]  ;;  %v989_v25 = vpack.c.bf16 %v842_v23, %v835_v22 }
 0x105   : > { %v701_v51 = vmul.f32 %v670_v50, %v521_v47  ;;  %v665_v52 = vpop.permute.xlu0 %664  ;;  %v952_v47 = vpack.c.bf16 %v770_v41, %v763_v39  ;;  %v946_v50 = vpack.c.bf16 %v757_v45, %v750_v44  ;;  %v1024_v39 = vpack.c.bf16 %v912_v33, %v905_v32  ;;  %v898_v44 = vld [vmem:[%s2119_s25 + $0x5a8] sm:$0xff]  ;;  %v876_v45 = vld [vmem:[%s2119_s25 + $0x4f8] sm:$0xff] }
 0x106   : > { %v700_v53 = vmul.f32 %v665_v52, %v520_v48  ;;  %1108 = vxpose.xlu1.c.b16.cont [7/8] (narrow) %v708_v49, 80  ;;  %v954_v48 = vpack.c.bf16 %v772_v43, %v765_v42  ;;  %v749_v49 = vld [vmem:[%s2119_s25 + $0x100] sm:$0xff]  ;;  %v751_v52 = vld [vmem:[%s2119_s25 + $0x110] sm:$0xff]  ;;  %v896_v42 = vld [vmem:[%s2119_s25 + $0x598] sm:$0xff] }
 0x107   : > { %v891_v43 = vld [vmem:[%s2119_s25 + $0x570] sm:$0xff] }
 0x108   : > { %v716_v56 = vpack.c.bf16 %v701_v51, %v700_v53  ;;  %v600_v57 = vpop.permute.xlu1 %599  ;;  %v756_v51 = vld [vmem:[%s2119_s25 + $0x138] sm:$0xff]  ;;  %v758_v53 = vld [vmem:[%s2119_s25 + $0x148] sm:$0xff] }
 0x109   : > { %v687_v58 = vmul.f32 %v600_v57, %v507_v54  ;;  %v595_v59 = vpop.permute.xlu0 %594  ;;  %v736_v54 = vld [vmem:[%s2119_s25 + $0x98] sm:$0xff]  ;;  %v945_v57 = vpack.c.bf16 %v756_v51, %v749_v49  ;;  %v1017_v49 = vpack.c.bf16 %v898_v44, %v891_v43  ;;  %v882_v51 = vld [vmem:[%s2119_s25 + $0x528] sm:$0xff] }
 0x10a   : > { %v686_v60 = vmul.f32 %v595_v59, %v506_v55  ;;  %1124 = vxpose.xlu0.c.b16.end [7/7] (short) (narrow) %v716_v56, 80  ;;  %v743_v55 = vld [vmem:[%s2119_s25 + $0xd0] sm:$0xff] }
 0x10b   : > { %v735_v59 = vld [vmem:[%s2119_s25 + $0x90] sm:$0xff] }
 0x10c   : > { %v709_v61 = vpack.c.bf16 %v687_v58, %v686_v60  ;;  %v947_v58 = vpack.c.bf16 %v758_v53, %v751_v52  ;;  %v939_v60 = vpack.c.bf16 %v743_v55, %v736_v54  ;;  %v877_v52 = vld [vmem:[%s2119_s25 + $0x500] sm:$0xff]  ;;  %v884_v53 = vld [vmem:[%s2119_s25 + $0x538] sm:$0xff]  ;;  %v862_v54 = vld [vmem:[%s2119_s25 + $0x488] sm:$0xff] }
 0x10d   : > { %v869_v55 = vld [vmem:[%s2119_s25 + $0x4c0] sm:$0xff] }
 0x10e   : > { %1109 = vxpose.xlu1.c.b16.end [8/8] (narrow) %v709_v61, 80  ;;  %v742_v61 = vld [vmem:[%s2119_s25 + $0xc8] sm:$0xff] }
 0x10f   : > { %v938_v3 = vpack.c.bf16 %v742_v61, %v735_v59  ;;  %v861_v59 = vld [vmem:[%s2119_s25 + $0x480] sm:$0xff]  ;;  %v868_v61 = vld [vmem:[%s2119_s25 + $0x4b8] sm:$0xff] }
 0x154   : > { %v2394_v8 = vpop.trf.xlu0  ;;  %v2396_v9 = vpop.trf.xlu1 }
 0x155   : > { %1867 = vmatprep.mubr.msk.bf16.mxu0 %vm1134_vm1, %v2394_v8  ;;  %1872 = vmatprep.mubr.msk.bf16.mxu1 %vm1134_vm1, %v2394_v8 }
 0x156   : > { %1183 = vmatmul.mubr.bf16.vlgmr.msra.gmra.mxu0 %v2396_v9  ;;  %1266 = vmatmul.mubr.bf16.vlgmr.msra.gmra.mxu1 %v2396_v9 }
 0x157   : > { %1317 = vmatpush1.bf16.msra.mxu0 %v980_v5  ;;  %1400 = vmatpush1.bf16.msra.mxu1 %v982_v6  ;;  %v940_v5 = vpack.c.bf16 %v744_v63, %v737_v62  ;;  %v721_v6 = vld [vmem:[%s2119_s25 + $0x20] sm:$0xff]  ;;  %v863_v62 = vld [vmem:[%s2119_s25 + $0x490] sm:$0xff]  ;;  %v870_v63 = vld [vmem:[%s2119_s25 + $0x4c8] sm:$0xff] }
 0x158   : > { %1318 = vmatprep.subr.bf16.mxu0 %v974_v10  ;;  %1401 = vmatprep.subr.bf16.mxu1 %v2071_v4  ;;  %v2411_v19 = vpop.trf.xlu0  ;;  %v2422_v26 = vpop.trf.xlu1  ;;  %v728_v10 = vld [vmem:[%s2119_s25 + $0x58] sm:$0xff] }
 0x159   : > { %1868 = vmatprep.mubr.msk.bf16.mxu0 %vm1134_vm1, %v2411_v19  ;;  %1873 = vmatprep.mubr.msk.bf16.mxu1 %vm1134_vm1, %v2411_v19 }
 0x15b   : > { %1319 = vmatpush1.bf16.msra.mxu0 %v973_v16  ;;  %1402 = vmatpush1.bf16.msra.mxu1 %v975_v17  ;;  %v931_v16 = vpack.c.bf16 %v728_v10, %v721_v6  ;;  %v933_v17 = vpack.c.bf16 %v730_v12, %v723_v11  ;;  %v847_v6 = vld [vmem:[%s2119_s25 + $0x410] sm:$0xff]  ;;  %v854_v10 = vld [vmem:[%s2119_s25 + $0x448] sm:$0xff]  ;;  %v849_v11 = vld [vmem:[%s2119_s25 + $0x420] sm:$0xff] }
 0x15c   : > { %1320 = vmatprep.subr.bf16.mxu0 %v967_v20  ;;  %1403 = vmatprep.subr.bf16.mxu1 %v2071_v4  ;;  %v2433_v36 = vpop.trf.xlu0  ;;  %v2446_v46 = vpop.trf.xlu1  ;;  %v1030_v20 = vpack.c.bf16 %v925_v14, %v918_v13  ;;  %v856_v12 = vld [vmem:[%s2119_s25 + $0x458] sm:$0xff]  ;;  %v834_v13 = vld [vmem:[%s2119_s25 + $0x3a8] sm:$0xff]  ;;  %v841_v14 = vld [vmem:[%s2119_s25 + $0x3e0] sm:$0xff] }
 0x15e   : > { %1193 = vmatmul.mubr.bf16.gmra.mxu0 %v2422_v26  ;;  %1276 = vmatmul.mubr.bf16.gmra.mxu1 %v2422_v26 }
 0x15f   : > { %1321 = vmatpush1.bf16.msra.mxu0 %v966_v27  ;;  %1404 = vmatpush1.bf16.msra.mxu1 %v968_v28  ;;  %v1029_v28 = vpack.c.bf16 %v924_v21, %v917_v18  ;;  %v833_v18 = vld [vmem:[%s2119_s25 + $0x3a0] sm:$0xff]  ;;  %v840_v21 = vld [vmem:[%s2119_s25 + $0x3d8] sm:$0xff] }
 0x160   : > { %1322 = vmatprep.subr.bf16.mxu0 %v960_v30  ;;  %1405 = vmatprep.subr.bf16.mxu1 %v2071_v4  ;;  %v2457_v56 = vpop.trf.xlu0  ;;  %v2470_v2 = vpop.trf.xlu1  ;;  %v903_v30 = vld [vmem:[%s2119_s25 + $0x5d0] sm:$0xff]  ;;  %v987_v24 = vpack.c.bf16 %v840_v21, %v833_v18  ;;  %v1069_v21 = vld [vmem:[#allocation2 + $0x128] sm:$0xff] }
 0x161   : > { %1869 = vmatprep.mubr.msk.bf16.mxu0 %vm1134_vm1, %v2433_v36  ;;  %1874 = vmatprep.mubr.msk.bf16.mxu1 %vm1134_vm1, %v2433_v36 }
 0x163   : > { %1323 = vmatpush1.bf16.msra.mxu0 %v959_v37  ;;  %1406 = vmatpush1.bf16.msra.mxu1 %v961_v38  ;;  %v897_v37 = vld [vmem:[%s2119_s25 + $0x5a0] sm:$0xff]  ;;  %v1022_v38 = vpack.c.bf16 %v910_v31, %v903_v30  ;;  %v1039_v30 = vld [vmem:[#allocation2 + $0x38] sm:$0xff]  ;;  %v1041_v31 = vld [vmem:[#allocation2 + $0x48] sm:$0xff] }
 0x164   : > { %1324 = vmatprep.subr.bf16.mxu0 %v953_v40  ;;  %1407 = vmatprep.subr.bf16.mxu1 %v2071_v4  ;;  %v2481_v15 = vpop.trf.xlu0  ;;  %v2494_v27 = vpop.trf.xlu1  ;;  %v889_v40 = vld [vmem:[%s2119_s25 + $0x560] sm:$0xff]  ;;  %v1016_v41 = vpack.c.bf16 %v897_v37, %v890_v35 }
 0x165   : > { %v1040_v35 = vld [vmem:[#allocation2 + $0x40] sm:$0xff] }
 0x166   : > { %1203 = vmatmul.mubr.bf16.gmra.mxu0 %v2446_v46  ;;  %1286 = vmatmul.mubr.bf16.gmra.mxu1 %v2446_v46 }
 0x167   : > { %1325 = vmatpush1.bf16.msra.mxu0 %v952_v47  ;;  %1408 = vmatpush1.bf16.msra.mxu1 %v954_v48  ;;  %v883_v47 = vld [vmem:[%s2119_s25 + $0x530] sm:$0xff]  ;;  %v1015_v48 = vpack.c.bf16 %v896_v42, %v889_v40  ;;  %v1048_v42 = vld [vmem:[#allocation2 + $0x80] sm:$0xff] }
 0x168   : > { %1326 = vmatprep.subr.bf16.mxu0 %v946_v50  ;;  %1409 = vmatprep.subr.bf16.mxu1 %v2071_v4  ;;  %v1009_v50 = vpack.c.bf16 %v883_v47, %v876_v45 }
 0x169   : > { %1870 = vmatprep.mubr.msk.bf16.mxu0 %vm1134_vm1, %v2457_v56  ;;  %1875 = vmatprep.mubr.msk.bf16.mxu1 %vm1134_vm1, %v2457_v56 }
 0x16b   : > { %1327 = vmatpush1.bf16.msra.mxu0 %v945_v57  ;;  %1410 = vmatpush1.bf16.msra.mxu1 %v947_v58  ;;  %v1010_v58 = vpack.c.bf16 %v884_v53, %v877_v52  ;;  %v1053_v53 = vld [vmem:[#allocation2 + $0xa8] sm:$0xff] }
 0x16c   : > { %1328 = vmatprep.subr.bf16.mxu0 %v939_v60  ;;  %1411 = vmatprep.subr.bf16.mxu1 %v2071_v4  ;;  %v1002_v60 = vpack.c.bf16 %v869_v55, %v862_v54  ;;  %v1055_v54 = vld [vmem:[#allocation2 + $0xb8] sm:$0xff] }
 0x16e   : > { %1213 = vmatmul.mubr.bf16.gmra.mxu0 %v2470_v2  ;;  %1296 = vmatmul.mubr.bf16.gmra.mxu1 %v2470_v2 }
 0x16f   : > { %1329 = vmatpush1.bf16.msra.mxu0 %v938_v3  ;;  %1412 = vmatpush1.bf16.msra.mxu1 %v940_v5  ;;  %v1001_v3 = vpack.c.bf16 %v868_v61, %v861_v59  ;;  %v1003_v5 = vpack.c.bf16 %v870_v63, %v863_v62  ;;  %v1056_v61 = vld [vmem:[#allocation2 + $0xc0] sm:$0xff] }
 0x170   : > { %1330 = vmatprep.subr.bf16.mxu0 %v932_v7  ;;  %1413 = vmatprep.subr.bf16.mxu1 %v2071_v4  ;;  %v995_v7 = vpack.c.bf16 %v855_v1, %v848_v0 }
 0x171   : > { %1871 = vmatprep.mubr.msk.bf16.mxu0 %vm1134_vm1, %v2481_v15  ;;  %1876 = vmatprep.mubr.msk.bf16.mxu1 %vm1134_vm1, %v2481_v15 }
 0x173   : > { %1331 = vmatpush1.bf16.msra.mxu0 %v931_v16  ;;  %1414 = vmatpush1.bf16.msra.mxu1 %v933_v17  ;;  %v994_v16 = vpack.c.bf16 %v854_v10, %v847_v6  ;;  %v996_v17 = vpack.c.bf16 %v856_v12, %v849_v11  ;;  %v1061_v12 = vld [vmem:[#allocation2 + $0xe8] sm:$0xff] }
 0x174   : > { %1334 = vmatprep.subr.bf16.mxu0 %v1030_v20  ;;  %1417 = vmatprep.subr.bf16.mxu1 %v2071_v4  ;;  %v988_v20 = vpack.c.bf16 %v841_v14, %v834_v13  ;;  %v1063_v13 = vld [vmem:[#allocation2 + $0xf8] sm:$0xff] }
 0x176   : > { %1223 = vmatmul.mubr.bf16.gmra.mxu0 %v2494_v27  ;;  %1306 = vmatmul.mubr.bf16.gmra.mxu1 %v2494_v27 }
 0x177   : > { %1335 = vmatpush2.bf16.msra.mxu0 %v1029_v28  ;;  %1418 = vmatpush2.bf16.msra.mxu1 %v1031_v29 }
 0x178   : > { %1877 = vmatprep.mubr.msk.bf16.mxu0 %vm1134_vm1, %v2394_v8  ;;  %1882 = vmatprep.mubr.msk.bf16.mxu1 %vm1134_vm1, %v2394_v8  ;;  %v875_v8 = vld [vmem:[%s2119_s25 + $0x4f0] sm:$0xff] }
 0x179   : > { %1336 = vmatprep.subr.bf16.mxu0 %v1023_v34  ;;  %1419 = vmatprep.subr.bf16.mxu1 %v2071_v4  ;;  %v1008_v57 = vpack.c.bf16 %v882_v51, %v875_v8 }
 0x17b   : > { %1337 = vmatpush2.bf16.msra.mxu0 %v1022_v38  ;;  %1420 = vmatpush2.bf16.msra.mxu1 %v1024_v39 }
 0x17c   : > { %1338 = vmatprep.subr.bf16.mxu0 %v1016_v41  ;;  %1421 = vmatprep.subr.bf16.mxu1 %v2071_v4  ;;  %v1046_v41 = vld [vmem:[#allocation2 + $0x70] sm:$0xff] }
 0x17f   : > { %1339 = vmatpush2.bf16.msra.mxu0 %v1015_v48  ;;  %1422 = vmatpush2.bf16.msra.mxu1 %v1017_v49  ;;  %v1047_v48 = vld [vmem:[#allocation2 + $0x78] sm:$0xff]  ;;  %v1049_v49 = vld [vmem:[#allocation2 + $0x88] sm:$0xff] }
 0x180   : > { %1340 = vmatprep.subr.bf16.mxu0 %v1009_v50  ;;  %1423 = vmatprep.subr.bf16.mxu1 %v2071_v4 }
 0x183   : > { %1341 = vmatpush2.bf16.msra.mxu0 %v1008_v57  ;;  %1424 = vmatpush2.bf16.msra.mxu1 %v1010_v58 }
 0x184   : > { %1342 = vmatprep.subr.bf16.mxu0 %v1002_v60  ;;  %1425 = vmatprep.subr.bf16.mxu1 %v2071_v4  ;;  %v1054_v60 = vld [vmem:[#allocation2 + $0xb0] sm:$0xff] }
 0x187   : > { %1343 = vmatpush2.bf16.msra.mxu0 %v1001_v3  ;;  %1426 = vmatpush2.bf16.msra.mxu1 %v1003_v5  ;;  %v1060_v3 = vld [vmem:[#allocation2 + $0xe0] sm:$0xff]  ;;  %v1062_v5 = vld [vmem:[#allocation2 + $0xf0] sm:$0xff] }
 0x188   : > { %1344 = vmatprep.subr.bf16.mxu0 %v995_v7  ;;  %1427 = vmatprep.subr.bf16.mxu1 %v2071_v4 }
 0x18b   : > { %1345 = vmatpush2.bf16.msra.mxu0 %v994_v16  ;;  %1428 = vmatpush2.bf16.msra.mxu1 %v996_v17 }
 0x18c   : > { %1346 = vmatprep.subr.bf16.mxu0 %v988_v20  ;;  %1429 = vmatprep.subr.bf16.mxu1 %v2071_v4  ;;  %v1032_v4 = vld [vmem:[#allocation2] sm:$0xff]  ;;  %v1067_v20 = vld [vmem:[#allocation2 + $0x118] sm:$0xff] }
 0x18f   : > { %1347 = vmatpush2.bf16.msra.mxu0 %v987_v24  ;;  %1430 = vmatpush2.bf16.msra.mxu1 %v989_v25 }
 0x192   : > { %1349 = vmatmul.mubr.bf16.vlgmr.msra.gmra.mxu0 %v2396_v9  ;;  %1432 = vmatmul.mubr.bf16.vlgmr.msra.gmra.mxu1 %v2396_v9  ;;  %v1034_v9 = vld [vmem:[#allocation2 + $0x10] sm:$0xff] }
 0x193   : > { %1878 = vmatprep.mubr.msk.bf16.mxu0 %vm1134_vm1, %v2411_v19  ;;  %1883 = vmatprep.mubr.msk.bf16.mxu1 %vm1134_vm1, %v2411_v19 }
 0x19a   : > { %1359 = vmatmul.mubr.bf16.gmra.mxu0 %v2422_v26  ;;  %1440 = vmatmul.mubr.bf16.gmra.mxu1 %v2422_v26 }
 0x19b   : > { %1879 = vmatprep.mubr.msk.bf16.mxu0 %vm1134_vm1, %v2433_v36  ;;  %1884 = vmatprep.mubr.msk.bf16.mxu1 %vm1134_vm1, %v2433_v36  ;;  %v1033_v36 = vld [vmem:[#allocation2 + $0x8] sm:$0xff] }
 0x1a2   : > { %1369 = vmatmul.mubr.bf16.gmra.mxu0 %v2446_v46  ;;  %1448 = vmatmul.mubr.bf16.gmra.mxu1 %v2446_v46  ;;  %v1035_v46 = vld [vmem:[#allocation2 + $0x18] sm:$0xff] }
 0x1a3   : > { %1880 = vmatprep.mubr.msk.bf16.mxu0 %vm1134_vm1, %v2457_v56  ;;  %1885 = vmatprep.mubr.msk.bf16.mxu1 %vm1134_vm1, %v2457_v56 }
 0x1aa   : > { %1379 = vmatmul.mubr.bf16.gmra.mxu0 %v2470_v2  ;;  %1456 = vmatmul.mubr.bf16.gmra.mxu1 %v2470_v2 }
 0x1ab   : > { %1881 = vmatprep.mubr.msk.bf16.mxu0 %vm1134_vm1, %v2481_v15  ;;  %1886 = vmatprep.mubr.msk.bf16.mxu1 %vm1134_vm1, %v2481_v15 }
 0x1b2   : > { %1389 = vmatmul.mubr.bf16.gmra.mxu0 %v2494_v27  ;;  %1464 = vmatmul.mubr.bf16.gmra.mxu1 %v2494_v27  ;;  %v1042_v27 = vld [vmem:[#allocation2 + $0x50] sm:$0xff] }
 0x216   : > { %v1184_v19 = vpop.f32.mrf.mxu0  ;;  %v1267_v26 = vpop.f32.mrf.mxu1 }
 0x217   : > { %v1472_v56 = vadd.f32 %v1184_v19, %v1032_v4  ;;  %v1474_v28 = vadd.f32 %v1267_v26, %v1034_v9  ;;  %v1068_v4 = vld [vmem:[#allocation2 + $0x120] sm:$0xff]  ;;  %v1070_v9 = vld [vmem:[#allocation2 + $0x130] sm:$0xff] }
 0x218   : > { %v1186_v29 = vpop.f32.mrf.mxu0  ;;  %v1269_v2 = vpop.f32.mrf.mxu1 }
 0x219   : > { %1542 = vst [vmem:[#allocation2] sm:$0xff] %v1472_v56  ;;  %1544 = vst [vmem:[#allocation2 + $0x10] sm:$0xff] %v1474_v28  ;;  %v1473_v32 = vadd.f32 %v1186_v29, %v1033_v36  ;;  %v1475_v15 = vadd.f32 %v1269_v2, %v1035_v46  ;;  %v1074_v56 = vld [vmem:[#allocation2 + $0x150] sm:$0xff]  ;;  %v1076_v28 = vld [vmem:[#allocation2 + $0x160] sm:$0xff] }
 0x21a   : > { %v1188_v33 = vpop.f32.mrf.mxu0  ;;  %v1271_v34 = vpop.f32.mrf.mxu1 }
 0x21b   : > { %1543 = vst [vmem:[#allocation2 + $0x8] sm:$0xff] %v1473_v32  ;;  %1545 = vst [vmem:[#allocation2 + $0x18] sm:$0xff] %v1475_v15  ;;  %v1479_v37 = vadd.f32 %v1188_v33, %v1039_v30  ;;  %v1481_v38 = vadd.f32 %v1271_v34, %v1041_v31  ;;  %v1075_v32 = vld [vmem:[#allocation2 + $0x158] sm:$0xff]  ;;  %v1077_v15 = vld [vmem:[#allocation2 + $0x168] sm:$0xff] }
 0x21c   : > { %v1190_v39 = vpop.f32.mrf.mxu0  ;;  %v1273_v40 = vpop.f32.mrf.mxu1 }
 0x21d   : > { %1550 = vst [vmem:[#allocation2 + $0x38] sm:$0xff] %v1479_v37  ;;  %1552 = vst [vmem:[#allocation2 + $0x48] sm:$0xff] %v1481_v38  ;;  %v1480_v43 = vadd.f32 %v1190_v39, %v1040_v35  ;;  %v1482_v44 = vadd.f32 %v1273_v40, %v1042_v27  ;;  %v1081_v37 = vld [vmem:[#allocation2 + $0x188] sm:$0xff]  ;;  %v1083_v38 = vld [vmem:[#allocation2 + $0x198] sm:$0xff] }
 0x21e   : > { %v1194_v45 = vpop.f32.mrf.mxu0  ;;  %v1277_v47 = vpop.f32.mrf.mxu1 }
 0x21f   : > { %1551 = vst [vmem:[#allocation2 + $0x40] sm:$0xff] %v1480_v43  ;;  %1553 = vst [vmem:[#allocation2 + $0x50] sm:$0xff] %v1482_v44  ;;  %v1486_v8 = vadd.f32 %v1194_v45, %v1046_v41  ;;  %v1488_v50 = vadd.f32 %v1277_v47, %v1048_v42  ;;  %v1082_v43 = vld [vmem:[#allocation2 + $0x190] sm:$0xff]  ;;  %v1084_v44 = vld [vmem:[#allocation2 + $0x1a0] sm:$0xff] }
 0x220   : > { %v1196_v51 = vpop.f32.mrf.mxu0  ;;  %v1279_v52 = vpop.f32.mrf.mxu1 }
 0x221   : > { %1557 = vst [vmem:[#allocation2 + $0x70] sm:$0xff] %v1486_v8  ;;  %1559 = vst [vmem:[#allocation2 + $0x80] sm:$0xff] %v1488_v50  ;;  %v1487_v55 = vadd.f32 %v1196_v51, %v1047_v48  ;;  %v1489_v57 = vadd.f32 %v1279_v52, %v1049_v49  ;;  %v1088_v8 = vld [vmem:[#allocation2 + $0x1c0] sm:$0xff]  ;;  %v1090_v50 = vld [vmem:[#allocation2 + $0x1d0] sm:$0xff] }
 0x222   : > { %v1198_v58 = vpop.f32.mrf.mxu0  ;;  %v1281_v59 = vpop.f32.mrf.mxu1 }
 0x223   : > { %1558 = vst [vmem:[#allocation2 + $0x78] sm:$0xff] %v1487_v55  ;;  %1560 = vst [vmem:[#allocation2 + $0x88] sm:$0xff] %v1489_v57  ;;  %v1493_v62 = vadd.f32 %v1198_v58, %v1053_v53  ;;  %v1495_v63 = vadd.f32 %v1281_v59, %v1055_v54  ;;  %v1089_v55 = vld [vmem:[#allocation2 + $0x1c8] sm:$0xff]  ;;  %v1091_v57 = vld [vmem:[#allocation2 + $0x1d8] sm:$0xff] }
 0x224   : > { %v1200_v0 = vpop.f32.mrf.mxu0  ;;  %v1283_v1 = vpop.f32.mrf.mxu1 }
 0x225   : > { %1564 = vst [vmem:[#allocation2 + $0xa8] sm:$0xff] %v1493_v62  ;;  %1566 = vst [vmem:[#allocation2 + $0xb8] sm:$0xff] %v1495_v63  ;;  %v1494_v6 = vadd.f32 %v1200_v0, %v1054_v60  ;;  %v1496_v7 = vadd.f32 %v1283_v1, %v1056_v61  ;;  %v1095_v62 = vld [vmem:[#allocation2 + $0x1f8] sm:$0xff]  ;;  %v1097_v63 = vld [vmem:[#allocation2 + $0x208] sm:$0xff] }
 0x226   : > { %v1204_v10 = vpop.f32.mrf.mxu0  ;;  %v1287_v11 = vpop.f32.mrf.mxu1 }
 0x227   : > { %1565 = vst [vmem:[#allocation2 + $0xb0] sm:$0xff] %v1494_v6  ;;  %1567 = vst [vmem:[#allocation2 + $0xc0] sm:$0xff] %v1496_v7  ;;  %v1500_v14 = vadd.f32 %v1204_v10, %v1060_v3  ;;  %v1502_v16 = vadd.f32 %v1287_v11, %v1062_v5  ;;  %v1096_v6 = vld [vmem:[#allocation2 + $0x200] sm:$0xff]  ;;  %v1098_v7 = vld [vmem:[#allocation2 + $0x210] sm:$0xff] }
 0x228   : > { %v1206_v17 = vpop.f32.mrf.mxu0  ;;  %v1289_v18 = vpop.f32.mrf.mxu1 }
 0x229   : > { %1571 = vst [vmem:[#allocation2 + $0xe0] sm:$0xff] %v1500_v14  ;;  %1573 = vst [vmem:[#allocation2 + $0xf0] sm:$0xff] %v1502_v16  ;;  %v1501_v22 = vadd.f32 %v1206_v17, %v1061_v12  ;;  %v1503_v23 = vadd.f32 %v1289_v18, %v1063_v13  ;;  %v1036_v17 = vld [vmem:[#allocation2 + $0x20] sm:$0xff]  ;;  %v1038_v18 = vld [vmem:[#allocation2 + $0x30] sm:$0xff] }
 0x22a   : > { %v1208_v24 = vpop.f32.mrf.mxu0  ;;  %v1291_v25 = vpop.f32.mrf.mxu1 }
 0x22b   : > { %1572 = vst [vmem:[#allocation2 + $0xe8] sm:$0xff] %v1501_v22  ;;  %1574 = vst [vmem:[#allocation2 + $0xf8] sm:$0xff] %v1503_v23  ;;  %v1507_v19 = vadd.f32 %v1208_v24, %v1067_v20  ;;  %v1509_v26 = vadd.f32 %v1291_v25, %v1069_v21  ;;  %v1037_v22 = vld [vmem:[#allocation2 + $0x28] sm:$0xff] }
 0x22c   : > { %v1210_v36 = vpop.f32.mrf.mxu0  ;;  %v1293_v46 = vpop.f32.mrf.mxu1 }
 0x22d   : > { %1578 = vst [vmem:[#allocation2 + $0x118] sm:$0xff] %v1507_v19  ;;  %1580 = vst [vmem:[#allocation2 + $0x128] sm:$0xff] %v1509_v26  ;;  %v1508_v29 = vadd.f32 %v1210_v36, %v1068_v4  ;;  %v1510_v2 = vadd.f32 %v1293_v46, %v1070_v9  ;;  %v1043_v9 = vld [vmem:[#allocation2 + $0x58] sm:$0xff]  ;;  %v1045_v19 = vld [vmem:[#allocation2 + $0x68] sm:$0xff] }
 0x22e   : > { %v1214_v30 = vpop.f32.mrf.mxu0  ;;  %v1297_v31 = vpop.f32.mrf.mxu1 }
 0x22f   : > { %1579 = vst [vmem:[#allocation2 + $0x120] sm:$0xff] %v1508_v29  ;;  %1581 = vst [vmem:[#allocation2 + $0x130] sm:$0xff] %v1510_v2  ;;  %v1514_v33 = vadd.f32 %v1214_v30, %v1074_v56  ;;  %v1516_v34 = vadd.f32 %v1297_v31, %v1076_v28  ;;  %v1044_v56 = vld [vmem:[#allocation2 + $0x60] sm:$0xff]  ;;  %v1050_v31 = vld [vmem:[#allocation2 + $0x90] sm:$0xff] }
 0x230   : > { %v1216_v35 = vpop.f32.mrf.mxu0  ;;  %v1299_v27 = vpop.f32.mrf.mxu1 }
 0x231   : > { %1585 = vst [vmem:[#allocation2 + $0x150] sm:$0xff] %v1514_v33  ;;  %1587 = vst [vmem:[#allocation2 + $0x160] sm:$0xff] %v1516_v34  ;;  %v1515_v39 = vadd.f32 %v1216_v35, %v1075_v32  ;;  %v1517_v40 = vadd.f32 %v1299_v27, %v1077_v15  ;;  %v1052_v32 = vld [vmem:[#allocation2 + $0xa0] sm:$0xff]  ;;  %v1051_v35 = vld [vmem:[#allocation2 + $0x98] sm:$0xff] }
 0x232   : > { %v1218_v41 = vpop.f32.mrf.mxu0  ;;  %v1301_v42 = vpop.f32.mrf.mxu1 }
 0x233   : > { %1586 = vst [vmem:[#allocation2 + $0x158] sm:$0xff] %v1515_v39  ;;  %1588 = vst [vmem:[#allocation2 + $0x168] sm:$0xff] %v1517_v40  ;;  %v1521_v45 = vadd.f32 %v1218_v41, %v1081_v37  ;;  %v1523_v47 = vadd.f32 %v1301_v42, %v1083_v38  ;;  %v1057_v40 = vld [vmem:[#allocation2 + $0xc8] sm:$0xff]  ;;  %v1059_v41 = vld [vmem:[#allocation2 + $0xd8] sm:$0xff] }
 0x234   : > { %v1220_v48 = vpop.f32.mrf.mxu0  ;;  %v1303_v49 = vpop.f32.mrf.mxu1 }
 0x235   : > { %1592 = vst [vmem:[#allocation2 + $0x188] sm:$0xff] %v1521_v45  ;;  %1594 = vst [vmem:[#allocation2 + $0x198] sm:$0xff] %v1523_v47  ;;  %v1522_v51 = vadd.f32 %v1220_v48, %v1082_v43  ;;  %v1524_v52 = vadd.f32 %v1303_v49, %v1084_v44  ;;  %v1058_v45 = vld [vmem:[#allocation2 + $0xd0] sm:$0xff] }
 0x236   : > { %v1224_v53 = vpop.f32.mrf.mxu0  ;;  %v1307_v54 = vpop.f32.mrf.mxu1 }
 0x237   : > { %1593 = vst [vmem:[#allocation2 + $0x190] sm:$0xff] %v1522_v51  ;;  %1595 = vst [vmem:[#allocation2 + $0x1a0] sm:$0xff] %v1524_v52  ;;  %v1528_v58 = vadd.f32 %v1224_v53, %v1088_v8  ;;  %v1530_v59 = vadd.f32 %v1307_v54, %v1090_v50  ;;  %v1064_v50 = vld [vmem:[#allocation2 + $0x100] sm:$0xff]  ;;  %v1066_v51 = vld [vmem:[#allocation2 + $0x110] sm:$0xff] }
 0x238   : > { %v1226_v60 = vpop.f32.mrf.mxu0  ;;  %v1309_v61 = vpop.f32.mrf.mxu1 }
 0x239   : > { %1599 = vst [vmem:[#allocation2 + $0x1c0] sm:$0xff] %v1528_v58  ;;  %1601 = vst [vmem:[#allocation2 + $0x1d0] sm:$0xff] %v1530_v59  ;;  %v1529_v0 = vadd.f32 %v1226_v60, %v1089_v55  ;;  %v1531_v1 = vadd.f32 %v1309_v61, %v1091_v57  ;;  %v1065_v55 = vld [vmem:[#allocation2 + $0x108] sm:$0xff]  ;;  %v1071_v61 = vld [vmem:[#allocation2 + $0x138] sm:$0xff] }
 0x23a   : > { %v1228_v3 = vpop.f32.mrf.mxu0  ;;  %v1311_v5 = vpop.f32.mrf.mxu1 }
 0x23b   : > { %1600 = vst [vmem:[#allocation2 + $0x1c8] sm:$0xff] %v1529_v0  ;;  %1602 = vst [vmem:[#allocation2 + $0x1d8] sm:$0xff] %v1531_v1  ;;  %v1535_v10 = vadd.f32 %v1228_v3, %v1095_v62  ;;  %v1537_v11 = vadd.f32 %v1311_v5, %v1097_v63  ;;  %v1073_v62 = vld [vmem:[#allocation2 + $0x148] sm:$0xff]  ;;  %v1072_v3 = vld [vmem:[#allocation2 + $0x140] sm:$0xff] }
 0x23c   : > { %v1230_v12 = vpop.f32.mrf.mxu0  ;;  %v1313_v13 = vpop.f32.mrf.mxu1 }
 0x23d   : > { %1606 = vst [vmem:[#allocation2 + $0x1f8] sm:$0xff] %v1535_v10  ;;  %1608 = vst [vmem:[#allocation2 + $0x208] sm:$0xff] %v1537_v11  ;;  %v1536_v14 = vadd.f32 %v1230_v12, %v1096_v6  ;;  %v1538_v16 = vadd.f32 %v1313_v13, %v1098_v7  ;;  %v1078_v11 = vld [vmem:[#allocation2 + $0x170] sm:$0xff]  ;;  %v1080_v12 = vld [vmem:[#allocation2 + $0x180] sm:$0xff] }
 0x23f   : > { %1607 = vst [vmem:[#allocation2 + $0x200] sm:$0xff] %v1536_v14  ;;  %1609 = vst [vmem:[#allocation2 + $0x210] sm:$0xff] %v1538_v16 }
 0x252   : > { %v1350_v20 = vpop.f32.mrf.mxu0  ;;  %v1433_v21 = vpop.f32.mrf.mxu1 }
 0x253   : > { %v1476_v23 = vadd.f32 %v1350_v20, %v1036_v17  ;;  %v1478_v24 = vadd.f32 %v1433_v21, %v1038_v18  ;;  %v1079_v17 = vld [vmem:[#allocation2 + $0x178] sm:$0xff] }
 0x254   : > { %v1352_v25 = vpop.f32.mrf.mxu0  ;;  %v1435_v4 = vpop.f32.mrf.mxu1 }
 0x255   : > { %1546 = vst [vmem:[#allocation2 + $0x20] sm:$0xff] %v1476_v23  ;;  %1549 = vst.msk [vmem:[#allocation2 + $0x30] sm:$0xff] %vm1548_vm2, %v1478_v24  ;;  %v1477_v26 = vadd.f32 %v1352_v25, %v1037_v22  ;;  %v1085_v23 = vld [vmem:[#allocation2 + $0x1a8] sm:$0xff]  ;;  %v1087_v24 = vld [vmem:[#allocation2 + $0x1b8] sm:$0xff] }
 0x256   : > { %v1354_v36 = vpop.f32.mrf.mxu0  ;;  %v1436_v46 = vpop.f32.mrf.mxu1 }
 0x257   : > { %1547 = vst [vmem:[#allocation2 + $0x28] sm:$0xff] %v1477_v26  ;;  %v1483_v28 = vadd.f32 %v1354_v36, %v1043_v9  ;;  %v1485_v29 = vadd.f32 %v1436_v46, %v1045_v19  ;;  %v1086_v19 = vld [vmem:[#allocation2 + $0x1b0] sm:$0xff] }
 0x258   : > { %v1356_v2 = vpop.f32.mrf.mxu0  ;;  %v1438_v30 = vpop.f32.mrf.mxu1 }
 0x259   : > { %1554 = vst [vmem:[#allocation2 + $0x58] sm:$0xff] %v1483_v28  ;;  %1556 = vst.msk [vmem:[#allocation2 + $0x68] sm:$0xff] %vm1548_vm2, %v1485_v29  ;;  %v1484_v15 = vadd.f32 %v1356_v2, %v1044_v56  ;;  %v1092_v28 = vld [vmem:[#allocation2 + $0x1e0] sm:$0xff]  ;;  %v1094_v29 = vld [vmem:[#allocation2 + $0x1f0] sm:$0xff] }
 0x25a   : > { %v1360_v33 = vpop.f32.mrf.mxu0  ;;  %v1441_v34 = vpop.f32.mrf.mxu1 }
 0x25b   : > { %1555 = vst [vmem:[#allocation2 + $0x60] sm:$0xff] %v1484_v15  ;;  %v1490_v27 = vadd.f32 %v1360_v33, %v1050_v31  ;;  %v1492_v37 = vadd.f32 %v1441_v34, %v1052_v32  ;;  %v1093_v32 = vld [vmem:[#allocation2 + $0x1e8] sm:$0xff] }
 0x25c   : > { %v1362_v38 = vpop.f32.mrf.mxu0  ;;  %v1443_v39 = vpop.f32.mrf.mxu1 }
 0x25d   : > { %1561 = vst [vmem:[#allocation2 + $0x90] sm:$0xff] %v1490_v27  ;;  %1563 = vst.msk [vmem:[#allocation2 + $0xa0] sm:$0xff] %vm1548_vm2, %v1492_v37  ;;  %v1491_v42 = vadd.f32 %v1362_v38, %v1051_v35  ;;  %v1099_v27 = vld [vmem:[#allocation2 + $0x218] sm:$0xff]  ;;  %v1101_v37 = vld [vmem:[#allocation2 + $0x228] sm:$0xff] }
 0x25e   : > { %v1364_v43 = vpop.f32.mrf.mxu0  ;;  %v1444_v44 = vpop.f32.mrf.mxu1 }
 0x25f   : > { %1562 = vst [vmem:[#allocation2 + $0x98] sm:$0xff] %v1491_v42  ;;  %v1497_v47 = vadd.f32 %v1364_v43, %v1057_v40  ;;  %v1499_v48 = vadd.f32 %v1444_v44, %v1059_v41  ;;  %v1100_v41 = vld [vmem:[#allocation2 + $0x220] sm:$0xff] }
 0x260   : > { %v1366_v49 = vpop.f32.mrf.mxu0  ;;  %v1446_v8 = vpop.f32.mrf.mxu1 }
 0x261   : > { %1568 = vst [vmem:[#allocation2 + $0xc8] sm:$0xff] %v1497_v47  ;;  %1570 = vst.msk [vmem:[#allocation2 + $0xd8] sm:$0xff] %vm1548_vm2, %v1499_v48  ;;  %v1498_v52 = vadd.f32 %v1366_v49, %v1058_v45 }
 0x262   : > { %v1370_v53 = vpop.f32.mrf.mxu0  ;;  %v1449_v54 = vpop.f32.mrf.mxu1 }
 0x263   : > { %1569 = vst [vmem:[#allocation2 + $0xd0] sm:$0xff] %v1498_v52  ;;  %v1504_v57 = vadd.f32 %v1370_v53, %v1064_v50  ;;  %v1506_v58 = vadd.f32 %v1449_v54, %v1066_v51 }
 0x264   : > { %v1372_v59 = vpop.f32.mrf.mxu0  ;;  %v1451_v60 = vpop.f32.mrf.mxu1 }
 0x265   : > { %1575 = vst [vmem:[#allocation2 + $0x100] sm:$0xff] %v1504_v57  ;;  %1577 = vst.msk [vmem:[#allocation2 + $0x110] sm:$0xff] %vm1548_vm2, %v1506_v58  ;;  %v1505_v63 = vadd.f32 %v1372_v59, %v1065_v55 }
 0x266   : > { %v1374_v0 = vpop.f32.mrf.mxu0  ;;  %v1452_v1 = vpop.f32.mrf.mxu1 }
 0x267   : > { %1576 = vst [vmem:[#allocation2 + $0x108] sm:$0xff] %v1505_v63  ;;  %v1511_v5 = vadd.f32 %v1374_v0, %v1071_v61  ;;  %v1513_v6 = vadd.f32 %v1452_v1, %v1073_v62 }
 0x268   : > { %v1376_v7 = vpop.f32.mrf.mxu0  ;;  %v1454_v10 = vpop.f32.mrf.mxu1 }
 0x269   : > { %1582 = vst [vmem:[#allocation2 + $0x138] sm:$0xff] %v1511_v5  ;;  %1584 = vst.msk [vmem:[#allocation2 + $0x148] sm:$0xff] %vm1548_vm2, %v1513_v6  ;;  %v1512_v13 = vadd.f32 %v1376_v7, %v1072_v3 }
 0x26a   : > { %v1380_v14 = vpop.f32.mrf.mxu0  ;;  %v1457_v16 = vpop.f32.mrf.mxu1 }
 0x26b   : > { %1583 = vst [vmem:[#allocation2 + $0x140] sm:$0xff] %v1512_v13  ;;  %v1518_v18 = vadd.f32 %v1380_v14, %v1078_v11  ;;  %v1520_v20 = vadd.f32 %v1457_v16, %v1080_v12 }
 0x26c   : > { %v1382_v21 = vpop.f32.mrf.mxu0  ;;  %v1459_v22 = vpop.f32.mrf.mxu1 }
 0x26d   : > { %1589 = vst [vmem:[#allocation2 + $0x170] sm:$0xff] %v1518_v18  ;;  %1591 = vst.msk [vmem:[#allocation2 + $0x180] sm:$0xff] %vm1548_vm2, %v1520_v20  ;;  %v1519_v25 = vadd.f32 %v1382_v21, %v1079_v17 }
 0x26e   : > { %v1384_v4 = vpop.f32.mrf.mxu0  ;;  %v1460_v9 = vpop.f32.mrf.mxu1 }
 0x26f   : > { %1590 = vst [vmem:[#allocation2 + $0x178] sm:$0xff] %v1519_v25  ;;  %v1525_v26 = vadd.f32 %v1384_v4, %v1085_v23  ;;  %v1527_v36 = vadd.f32 %v1460_v9, %v1087_v24 }
 0x270   : > { %v1386_v46 = vpop.f32.mrf.mxu0  ;;  %v1462_v56 = vpop.f32.mrf.mxu1 }
 0x271   : > { %1596 = vst [vmem:[#allocation2 + $0x1a8] sm:$0xff] %v1525_v26  ;;  %1598 = vst.msk [vmem:[#allocation2 + $0x1b8] sm:$0xff] %vm1548_vm2, %v1527_v36  ;;  %v1526_v2 = vadd.f32 %v1386_v46, %v1086_v19 }
 0x272   : > { %v1390_v30 = vpop.f32.mrf.mxu0  ;;  %v1465_v31 = vpop.f32.mrf.mxu1 }
 0x273   : > { %1597 = vst [vmem:[#allocation2 + $0x1b0] sm:$0xff] %v1526_v2  ;;  %v1532_v15 = vadd.f32 %v1390_v30, %v1092_v28  ;;  %v1534_v33 = vadd.f32 %v1465_v31, %v1094_v29 }
 0x274   : > { %v1392_v34 = vpop.f32.mrf.mxu0  ;;  %v1467_v35 = vpop.f32.mrf.mxu1 }
 0x275   : > { %1603 = vst [vmem:[#allocation2 + $0x1e0] sm:$0xff] %v1532_v15  ;;  %1605 = vst.msk [vmem:[#allocation2 + $0x1f0] sm:$0xff] %vm1548_vm2, %v1534_v33  ;;  %v1533_v38 = vadd.f32 %v1392_v34, %v1093_v32 }
 0x276   : > { %v1394_v39 = vpop.f32.mrf.mxu0  ;;  %v1468_v40 = vpop.f32.mrf.mxu1 }
 0x277   : > { %1604 = vst [vmem:[#allocation2 + $0x1e8] sm:$0xff] %v1533_v38  ;;  %v1539_v42 = vadd.f32 %v1394_v39, %v1099_v27  ;;  %v1541_v43 = vadd.f32 %v1468_v40, %v1101_v37  ;;  %1616 = sbr.rel (%p1887_p5) target bundleno = 672 (0x2a0), region = 40 }
 0x278   : > { %v1396_v44 = vpop.f32.mrf.mxu0  ;;  %v1470_v45 = vpop.f32.mrf.mxu1 }
 0x279   : > { %1610 = vst [vmem:[#allocation2 + $0x218] sm:$0xff] %v1539_v42  ;;  %1612 = vst.msk [vmem:[#allocation2 + $0x228] sm:$0xff] %vm1548_vm2, %v1541_v43  ;;  %v1540_v47 = vadd.f32 %v1396_v44, %v1100_v41 }
 0x27b   : > { %1611 = vst [vmem:[#allocation2 + $0x220] sm:$0xff] %v1540_v47 }
 0x27c   : > { %v1617_v48 = vld [vmem:[#allocation2] sm:$0xff]  ;;  %v1618_v49 = vld [vmem:[#allocation2 + $0x8] sm:$0xff]  ;;  %v1619_v8 = vld [vmem:[#allocation2 + $0x10] sm:$0xff] }
 0x27d   : > { %1687 = vst [vmem:[#allocation3] sm:$0xff] %v1617_v48  ;;  %1688 = vst [vmem:[#allocation3 + $0x8] sm:$0xff] %v1618_v49  ;;  %v1620_v50 = vld [vmem:[#allocation2 + $0x18] sm:$0xff]  ;;  %v1621_v51 = vld [vmem:[#allocation2 + $0x20] sm:$0xff] }
 0x27e   : > { %1689 = vst [vmem:[#allocation3 + $0x10] sm:$0xff] %v1619_v8  ;;  %v1622_v52 = vld [vmem:[#allocation2 + $0x28] sm:$0xff]  ;;  %1690 = vst [vmem:[#allocation3 + $0x18] sm:$0xff] %v1620_v50  ;;  %v1623_v53 = vld [vmem:[#allocation2 + $0x30] sm:$0xff] }
 0x27f   : > { %1691 = vst [vmem:[#allocation3 + $0x20] sm:$0xff] %v1621_v51  ;;  %1692 = vst [vmem:[#allocation3 + $0x28] sm:$0xff] %v1622_v52  ;;  %v1624_v54 = vld [vmem:[#allocation2 + $0x38] sm:$0xff]  ;;  %v1625_v55 = vld [vmem:[#allocation2 + $0x40] sm:$0xff] }
 0x280   : > { %1693 = vst.msk [vmem:[#allocation3 + $0x30] sm:$0xff] %vm1548_vm2, %v1623_v53  ;;  %1694 = vst [vmem:[#allocation3 + $0x38] sm:$0xff] %v1624_v54  ;;  %v1626_v57 = vld [vmem:[#allocation2 + $0x48] sm:$0xff]  ;;  %v1627_v58 = vld [vmem:[#allocation2 + $0x50] sm:$0xff] }
 0x281   : > { %1695 = vst [vmem:[#allocation3 + $0x40] sm:$0xff] %v1625_v55  ;;  %v1628_v59 = vld [vmem:[#allocation2 + $0x58] sm:$0xff]  ;;  %1696 = vst [vmem:[#allocation3 + $0x48] sm:$0xff] %v1626_v57  ;;  %v1629_v60 = vld [vmem:[#allocation2 + $0x60] sm:$0xff] }
 0x282   : > { %1697 = vst [vmem:[#allocation3 + $0x50] sm:$0xff] %v1627_v58  ;;  %1698 = vst [vmem:[#allocation3 + $0x58] sm:$0xff] %v1628_v59  ;;  %v1630_v61 = vld [vmem:[#allocation2 + $0x68] sm:$0xff]  ;;  %v1631_v62 = vld [vmem:[#allocation2 + $0x70] sm:$0xff] }
 0x283   : > { %1699 = vst [vmem:[#allocation3 + $0x60] sm:$0xff] %v1629_v60  ;;  %1700 = vst.msk [vmem:[#allocation3 + $0x68] sm:$0xff] %vm1548_vm2, %v1630_v61  ;;  %v1632_v63 = vld [vmem:[#allocation2 + $0x78] sm:$0xff]  ;;  %v1633_v0 = vld [vmem:[#allocation2 + $0x80] sm:$0xff] }
 0x284   : > { %1701 = vst [vmem:[#allocation3 + $0x70] sm:$0xff] %v1631_v62  ;;  %v1634_v1 = vld [vmem:[#allocation2 + $0x88] sm:$0xff]  ;;  %1702 = vst [vmem:[#allocation3 + $0x78] sm:$0xff] %v1632_v63  ;;  %v1635_v3 = vld [vmem:[#allocation2 + $0x90] sm:$0xff] }
 0x285   : > { %1703 = vst [vmem:[#allocation3 + $0x80] sm:$0xff] %v1633_v0  ;;  %1704 = vst [vmem:[#allocation3 + $0x88] sm:$0xff] %v1634_v1  ;;  %v1636_v5 = vld [vmem:[#allocation2 + $0x98] sm:$0xff]  ;;  %v1637_v6 = vld [vmem:[#allocation2 + $0xa0] sm:$0xff] }
 0x286   : > { %1705 = vst [vmem:[#allocation3 + $0x90] sm:$0xff] %v1635_v3  ;;  %1706 = vst [vmem:[#allocation3 + $0x98] sm:$0xff] %v1636_v5  ;;  %v1638_v7 = vld [vmem:[#allocation2 + $0xa8] sm:$0xff]  ;;  %v1639_v10 = vld [vmem:[#allocation2 + $0xb0] sm:$0xff] }
 0x287   : > { %1707 = vst.msk [vmem:[#allocation3 + $0xa0] sm:$0xff] %vm1548_vm2, %v1637_v6  ;;  %v1640_v11 = vld [vmem:[#allocation2 + $0xb8] sm:$0xff]  ;;  %1708 = vst [vmem:[#allocation3 + $0xa8] sm:$0xff] %v1638_v7  ;;  %v1641_v12 = vld [vmem:[#allocation2 + $0xc0] sm:$0xff] }
 0x288   : > { %1709 = vst [vmem:[#allocation3 + $0xb0] sm:$0xff] %v1639_v10  ;;  %1710 = vst [vmem:[#allocation3 + $0xb8] sm:$0xff] %v1640_v11  ;;  %v1642_v13 = vld [vmem:[#allocation2 + $0xc8] sm:$0xff]  ;;  %v1643_v14 = vld [vmem:[#allocation2 + $0xd0] sm:$0xff] }
 0x289   : > { %1711 = vst [vmem:[#allocation3 + $0xc0] sm:$0xff] %v1641_v12  ;;  %1712 = vst [vmem:[#allocation3 + $0xc8] sm:$0xff] %v1642_v13  ;;  %v1644_v16 = vld [vmem:[#allocation2 + $0xd8] sm:$0xff]  ;;  %v1645_v17 = vld [vmem:[#allocation2 + $0xe0] sm:$0xff] }
 0x28a   : > { %1713 = vst [vmem:[#allocation3 + $0xd0] sm:$0xff] %v1643_v14  ;;  %v1646_v18 = vld [vmem:[#allocation2 + $0xe8] sm:$0xff]  ;;  %1714 = vst.msk [vmem:[#allocation3 + $0xd8] sm:$0xff] %vm1548_vm2, %v1644_v16  ;;  %v1647_v20 = vld [vmem:[#allocation2 + $0xf0] sm:$0xff] }
 0x28b   : > { %1715 = vst [vmem:[#allocation3 + $0xe0] sm:$0xff] %v1645_v17  ;;  %1716 = vst [vmem:[#allocation3 + $0xe8] sm:$0xff] %v1646_v18  ;;  %v1648_v21 = vld [vmem:[#allocation2 + $0xf8] sm:$0xff]  ;;  %v1649_v22 = vld [vmem:[#allocation2 + $0x100] sm:$0xff] }
 0x28c   : > { %1717 = vst [vmem:[#allocation3 + $0xf0] sm:$0xff] %v1647_v20  ;;  %1718 = vst [vmem:[#allocation3 + $0xf8] sm:$0xff] %v1648_v21  ;;  %v1650_v23 = vld [vmem:[#allocation2 + $0x108] sm:$0xff]  ;;  %v1651_v24 = vld [vmem:[#allocation2 + $0x110] sm:$0xff] }
 0x28d   : > { %1719 = vst [vmem:[#allocation3 + $0x100] sm:$0xff] %v1649_v22  ;;  %v1652_v25 = vld [vmem:[#allocation2 + $0x118] sm:$0xff]  ;;  %1720 = vst [vmem:[#allocation3 + $0x108] sm:$0xff] %v1650_v23  ;;  %v1653_v4 = vld [vmem:[#allocation2 + $0x120] sm:$0xff] }
 0x28e   : > { %1721 = vst.msk [vmem:[#allocation3 + $0x110] sm:$0xff] %vm1548_vm2, %v1651_v24  ;;  %1722 = vst [vmem:[#allocation3 + $0x118] sm:$0xff] %v1652_v25  ;;  %v1654_v9 = vld [vmem:[#allocation2 + $0x128] sm:$0xff]  ;;  %v1655_v19 = vld [vmem:[#allocation2 + $0x130] sm:$0xff] }
 0x28f   : > { %1723 = vst [vmem:[#allocation3 + $0x120] sm:$0xff] %v1653_v4  ;;  %1724 = vst [vmem:[#allocation3 + $0x128] sm:$0xff] %v1654_v9  ;;  %v1656_v26 = vld [vmem:[#allocation2 + $0x138] sm:$0xff]  ;;  %v1657_v36 = vld [vmem:[#allocation2 + $0x140] sm:$0xff] }
 0x290   : > { %1725 = vst [vmem:[#allocation3 + $0x130] sm:$0xff] %v1655_v19  ;;  %v1658_v46 = vld [vmem:[#allocation2 + $0x148] sm:$0xff]  ;;  %1726 = vst [vmem:[#allocation3 + $0x138] sm:$0xff] %v1656_v26  ;;  %v1659_v56 = vld [vmem:[#allocation2 + $0x150] sm:$0xff] }
 0x291   : > { %1727 = vst [vmem:[#allocation3 + $0x140] sm:$0xff] %v1657_v36  ;;  %1728 = vst.msk [vmem:[#allocation3 + $0x148] sm:$0xff] %vm1548_vm2, %v1658_v46  ;;  %v1660_v28 = vld [vmem:[#allocation2 + $0x158] sm:$0xff]  ;;  %v1661_v29 = vld [vmem:[#allocation2 + $0x160] sm:$0xff] }
 0x292   : > { %1729 = vst [vmem:[#allocation3 + $0x150] sm:$0xff] %v1659_v56  ;;  %1730 = vst [vmem:[#allocation3 + $0x158] sm:$0xff] %v1660_v28  ;;  %v1662_v2 = vld [vmem:[#allocation2 + $0x168] sm:$0xff]  ;;  %v1663_v30 = vld [vmem:[#allocation2 + $0x170] sm:$0xff] }
 0x293   : > { %1731 = vst [vmem:[#allocation3 + $0x160] sm:$0xff] %v1661_v29  ;;  %v1664_v31 = vld [vmem:[#allocation2 + $0x178] sm:$0xff]  ;;  %1732 = vst [vmem:[#allocation3 + $0x168] sm:$0xff] %v1662_v2  ;;  %v1665_v32 = vld [vmem:[#allocation2 + $0x180] sm:$0xff] }
 0x294   : > { %1733 = vst [vmem:[#allocation3 + $0x170] sm:$0xff] %v1663_v30  ;;  %1734 = vst [vmem:[#allocation3 + $0x178] sm:$0xff] %v1664_v31  ;;  %v1666_v15 = vld [vmem:[#allocation2 + $0x188] sm:$0xff]  ;;  %v1667_v33 = vld [vmem:[#allocation2 + $0x190] sm:$0xff] }
 0x295   : > { %1735 = vst.msk [vmem:[#allocation3 + $0x180] sm:$0xff] %vm1548_vm2, %v1665_v32  ;;  %1736 = vst [vmem:[#allocation3 + $0x188] sm:$0xff] %v1666_v15  ;;  %v1668_v34 = vld [vmem:[#allocation2 + $0x198] sm:$0xff]  ;;  %v1669_v35 = vld [vmem:[#allocation2 + $0x1a0] sm:$0xff] }
 0x296   : > { %1737 = vst [vmem:[#allocation3 + $0x190] sm:$0xff] %v1667_v33  ;;  %v1670_v27 = vld [vmem:[#allocation2 + $0x1a8] sm:$0xff]  ;;  %1738 = vst [vmem:[#allocation3 + $0x198] sm:$0xff] %v1668_v34  ;;  %v1671_v37 = vld [vmem:[#allocation2 + $0x1b0] sm:$0xff] }
 0x297   : > { %1739 = vst [vmem:[#allocation3 + $0x1a0] sm:$0xff] %v1669_v35  ;;  %1740 = vst [vmem:[#allocation3 + $0x1a8] sm:$0xff] %v1670_v27  ;;  %v1672_v38 = vld [vmem:[#allocation2 + $0x1b8] sm:$0xff]  ;;  %v1673_v39 = vld [vmem:[#allocation2 + $0x1c0] sm:$0xff] }
 0x298   : > { %1741 = vst [vmem:[#allocation3 + $0x1b0] sm:$0xff] %v1671_v37  ;;  %1742 = vst.msk [vmem:[#allocation3 + $0x1b8] sm:$0xff] %vm1548_vm2, %v1672_v38  ;;  %v1674_v40 = vld [vmem:[#allocation2 + $0x1c8] sm:$0xff]  ;;  %v1675_v41 = vld [vmem:[#allocation2 + $0x1d0] sm:$0xff] }
 0x299   : > { %1743 = vst [vmem:[#allocation3 + $0x1c0] sm:$0xff] %v1673_v39  ;;  %v1676_v42 = vld [vmem:[#allocation2 + $0x1d8] sm:$0xff]  ;;  %1744 = vst [vmem:[#allocation3 + $0x1c8] sm:$0xff] %v1674_v40  ;;  %v1677_v43 = vld [vmem:[#allocation2 + $0x1e0] sm:$0xff] }
 0x29a   : > { %1745 = vst [vmem:[#allocation3 + $0x1d0] sm:$0xff] %v1675_v41  ;;  %1746 = vst [vmem:[#allocation3 + $0x1d8] sm:$0xff] %v1676_v42  ;;  %v1678_v44 = vld [vmem:[#allocation2 + $0x1e8] sm:$0xff]  ;;  %v1679_v45 = vld [vmem:[#allocation2 + $0x1f0] sm:$0xff] }
 0x29b   : > { %1747 = vst [vmem:[#allocation3 + $0x1e0] sm:$0xff] %v1677_v43  ;;  %1748 = vst [vmem:[#allocation3 + $0x1e8] sm:$0xff] %v1678_v44  ;;  %v1680_v47 = vld [vmem:[#allocation2 + $0x1f8] sm:$0xff]  ;;  %v1681_v48 = vld [vmem:[#allocation2 + $0x200] sm:$0xff] }
 0x29c   : > { %1749 = vst.msk [vmem:[#allocation3 + $0x1f0] sm:$0xff] %vm1548_vm2, %v1679_v45  ;;  %v1682_v49 = vld [vmem:[#allocation2 + $0x208] sm:$0xff]  ;;  %1750 = vst [vmem:[#allocation3 + $0x1f8] sm:$0xff] %v1680_v47  ;;  %v1683_v8 = vld [vmem:[#allocation2 + $0x210] sm:$0xff] }
 0x29d   : > { %1751 = vst [vmem:[#allocation3 + $0x200] sm:$0xff] %v1681_v48  ;;  %1752 = vst [vmem:[#allocation3 + $0x208] sm:$0xff] %v1682_v49  ;;  %v1684_v50 = vld [vmem:[#allocation2 + $0x218] sm:$0xff]  ;;  %v1685_v51 = vld [vmem:[#allocation2 + $0x220] sm:$0xff] }
 0x29e   : > { %1753 = vst [vmem:[#allocation3 + $0x210] sm:$0xff] %v1683_v8  ;;  %1754 = vst [vmem:[#allocation3 + $0x218] sm:$0xff] %v1684_v50  ;;  %v1686_v52 = vld [vmem:[#allocation2 + $0x228] sm:$0xff] }
 0x29f   : > { %1755 = vst [vmem:[#allocation3 + $0x220] sm:$0xff] %v1685_v51  ;;  %1756 = vst.msk [vmem:[#allocation3 + $0x228] sm:$0xff] %vm1548_vm2, %v1686_v52 }
 0x2a0 PF: > { %p1897_p6 = scmp.eq.s32.totalorder %s2101_s13, 1  ;;  %s2072_s26 = smov [#allocation3]  }
 0x2a1   : > { %s1763_s27 = sshll.u32 %s2072_s26, 4  ;;  %s1764_s27 = int_to_ptr.vmem [resolvable:$true] %s1763_s27 }
 0x2a2   : > { %s2034_s28 = scalar_lea.vmem %s1764_s27, 8960  ;;  %p2041_p10 = scmp.lt.s32.totalorder %s1764_s27, %s1764_s27 }
 0x2a3   : > { %p2035_p7 = scmp.ne.s32.totalorder %s1764_s27, %s2034_s28  ;;  %p2042_p11 = scmp.lt.s32.totalorder %s2034_s28, %s2034_s28 }
 0x2a5   : > { %p2036_p8 = pnand %p2035_p7, %p1897_p6  ;;  %p2043_p12 = por %p2042_p11, %p2041_p10 }
 0x2a7   : > { %p2037_p9 = pneg %p2036_p8 }
 0x2a9   : > { %p2044_p13 = pnand %p2043_p12, %p2037_p9 }
 0x2ab   : > { %2047 = shalt.err (!%p2044_p13)
}
 0x2ac   : > { %s2073_s29 = smov 896   ;;  %s2074_s30 = smov 56  }
 0x2ad   : > { %1894 = dma.vmem_to_hbm [thread:$0]  (%p1897_p6), %s1764_s27, 8960, %s2608_s3, [#allocation4], %s2073_s29, %s2073_s29, %s2074_s30  }
 0x2ae   : > { %2063 = dma.done.wait (%p1897_p6), [#allocation4], 8960  }
 0x2af   : > { %2065 = vsyncadd (%p1897_p6), [#allocation4], 4294958336 }
 0x2b0 PF: > { %s14_s12 = sadd.s32 1, %s2068_s12  }
 0x2b1   : > { %p11_p0 = scmp.ge.s32.totalorder %s14_s12, 4  }
 0x2b3   :  { %13 = sbr.rel (!%p11_p0) target bundleno = 1 (0x1), region = 73 }
 0x2b8   :  { %1779 = vsyncpa [#allocation4], 1 }
 0x2b9   :  { %1781 = vsyncpa [#allocation4 + $0x1], 1 }

</bundles_post_ra>
